<compile_context>
chip_gen: v6e
topology: v6e:2x2x1
jax: 0.10.0
libtpu: 0.0.40
codegen_flags: <defaults>
</compile_context>

<pallas_src>
import functools
import math

import jax
import jax.numpy as jnp
from jax.experimental import pallas as pl
from jax.experimental.pallas import tpu as pltpu


def fire_kernel(scalars_ref, w1_ref, b1_ref, w2_ref, b2_ref, out_ref, *,
                seq_len: int, q_tile: int, k_chunk: int, mlp_width: int,
                num_heads: int, eps: float):
    """One grid step: FIRE bias for query rows [i*q_tile, (i+1)*q_tile).

    scalars_ref : (3,)            f32 SMEM   [c, L_multiplier, init_L]
    w1_ref      : (mlp_width,)    f32 SMEM   Linear(1, M) weight
    b1_ref      : (mlp_width,)    f32 SMEM
    w2_ref      : (mlp_width*H,)  f32 SMEM   Linear(M, H) weight, flat [m*H + h]
    b2_ref      : (num_heads,)    f32 SMEM
    out_ref     : (H, q_tile, S)  VMEM       lane-dense along the key axis
    """
    S = seq_len
    assert S % k_chunk == 0, (S, k_chunk)
    n_chunks = S // k_chunk
    q0 = pl.program_id(0) * q_tile

    # ---- per-query-row quantities: computed once per grid step (~1 vreg each) ----
    q_col = (jax.lax.broadcasted_iota(jnp.int32, (q_tile, 1), 0) + q0).astype(
        jnp.float32)                                               # (q_tile, 1)
    c_abs = jnp.abs(scalars_ref[0])                                # |c|
    threshold = jnp.abs(scalars_ref[1] * scalars_ref[2])           # |L_mult * init_L|
    pos_norm = jnp.maximum(q_col, threshold)                       # (q_tile, 1)
    # Exact division (tiny count: q_tile values); matches the reference numerics.
    inv_pn = 1.0 / (jnp.log(c_abs * pos_norm + 1.0) + eps)         # (q_tile, 1)

    def process_chunk(ks):
        """Compute and store a (q_tile, k_chunk) key-slab for all heads.

        Everything here (nd, hm, the H accumulators) is sized to live in vregs.
        """
        k_row = (jax.lax.broadcasted_iota(jnp.int32, (1, k_chunk), 1)
                 + ks).astype(jnp.float32)                         # (1, k_chunk)
        rel_log = jnp.log(c_abs * jnp.abs(q_col - k_row) + 1.0)    # (q_tile, k_chunk)
        nd = rel_log * inv_pn                                      # (q_tile, k_chunk)

        # MLP: Linear(1, M) -> ReLU -> Linear(M, H), per-head VPU FMA accumulation.
        # Accumulators start from the m = 0 term; b2 is folded into the store.
        hm = jnp.maximum(nd * w1_ref[0] + b1_ref[0], 0.0)
        accs = [hm * w2_ref[h] for h in range(num_heads)]
        for m in range(1, mlp_width):
            hm = jnp.maximum(nd * w1_ref[m] + b1_ref[m], 0.0)
            for h in range(num_heads):
                accs[h] = accs[h] + hm * w2_ref[m * num_heads + h]

        for h in range(num_heads):
            out_ref[h, :, pl.ds(ks, k_chunk)] = (
                accs[h] + b2_ref[h]).astype(out_ref.dtype)

    if n_chunks == 1:
        process_chunk(0)
    else:
        @pl.loop(0, n_chunks)
        def _(ci):
            process_chunk(pl.multiple_of(ci * k_chunk, k_chunk))


def _pick_tiles(seq_len: int, seq_len_pad: int, num_heads: int, out_itemsize: int,
                *, k_target: int = 256, reg_budget_elems: int = 8192,
                vmem_out_budget: int = 24 << 20) -> tuple[int, int]:
    """Pick (q_tile, k_chunk).

    k_chunk: multiple of 128 dividing seq_len when possible (lane-dense stores),
             otherwise the full row.
    q_tile : multiple of 8 dividing the padded query extent, bounded by
             (a) the register-blocking budget (q_tile * k_chunk ~ reg_budget_elems),
             (b) the double-buffered output block staying under vmem_out_budget
                 (v7x only has 64 MiB physical VMEM),
             and preferring >= 2 grid steps so v7x's 2nd TensorCore gets work.
    """
    S = seq_len
    if S <= k_target:
        k_chunk = S
    else:
        k_chunk = max(128, (k_target // 128) * 128)
        while S % k_chunk != 0 and k_chunk > 128:
            k_chunk -= 128
        if S % k_chunk != 0:
            k_chunk = S  # awkward seq_len: one (possibly wide) chunk per row

    reg_rows = max(8, (reg_budget_elems // max(k_chunk, 1)) // 8 * 8)
    vmem_rows = max(8, (vmem_out_budget // (2 * num_heads * S * out_itemsize)) // 8 * 8)
    cap = min(reg_rows, vmem_rows)

    divisors = [t for t in range(8, seq_len_pad + 1, 8) if seq_len_pad % t == 0]
    multi = [t for t in divisors if t <= cap and seq_len_pad // t >= 2]
    if multi:
        return max(multi), k_chunk
    fits = [t for t in divisors if t <= cap]
    return (max(fits) if fits else 8), k_chunk


def fire_bias_pallas(seq_len: int, params: dict, *, num_heads: int,
                     mlp_width: int, eps: float = 1e-6,
                     out_dtype=jnp.float32,
                     q_tile: int | None = None,
                     k_chunk: int | None = None) -> jax.Array:
    """Returns the FIRE attention bias with shape [1, num_heads, seq_len, seq_len]."""
    S = seq_len
    S_pad = -(-S // 8) * 8                       # pad query axis to a multiple of 8
    out_itemsize = jnp.dtype(out_dtype).itemsize

    auto_q, auto_k = _pick_tiles(S, S_pad, num_heads, out_itemsize)
    if q_tile is None:
        q_tile = auto_q
    if k_chunk is None:
        k_chunk = auto_k
    assert S_pad % q_tile == 0 and q_tile % 8 == 0, (S_pad, q_tile)
    assert S % k_chunk == 0, (S, k_chunk)
    grid = (S_pad // q_tile,)

    scalars = jnp.stack(
        [params["c"], params["L_multiplier"], params["init_L"]]).astype(jnp.float32)
    w1 = params["w1"].astype(jnp.float32)
    b1 = params["b1"].astype(jnp.float32)
    w2_flat = params["w2"].astype(jnp.float32).reshape(-1)   # (M, H) row-major -> m*H + h
    b2 = params["b2"].astype(jnp.float32)

    kernel = functools.partial(
        fire_kernel, seq_len=S, q_tile=q_tile, k_chunk=k_chunk,
        mlp_width=mlp_width, num_heads=num_heads, eps=eps)

    smem_specs = [pl.BlockSpec(memory_space=pltpu.MemorySpace.SMEM) for _ in range(5)]

    # VMEM: double-buffered output block + a small allowance for in-kernel scratch.
    out_block_bytes = num_heads * q_tile * S * out_itemsize
    vmem_limit = int(min(100 << 20, max(16 << 20, 2 * out_block_bytes + (4 << 20))))

    cost = pl.CostEstimate(
        flops=int(S_pad) * int(S) * (mlp_width * (2 + 2 * num_heads) + 6),
        transcendentals=int(S_pad) * int(S) + int(S_pad),
        bytes_accessed=num_heads * int(S_pad) * int(S) * out_itemsize)

    out = pl.pallas_call(
        kernel,
        grid=grid,
        out_shape=jax.ShapeDtypeStruct((num_heads, S_pad, S), out_dtype),
        in_specs=smem_specs,
        out_specs=pl.BlockSpec((num_heads, q_tile, S), lambda i: (0, i, 0)),
        compiler_params=pltpu.CompilerParams(
            dimension_semantics=("parallel",),
            vmem_limit_bytes=vmem_limit),
        cost_estimate=cost,
    )(scalars, w1, b1, w2_flat, b2)

    if S_pad != S:
        out = out[:, :S, :]                       # drop padded query rows
    # Kernel emits (H, S, S) directly; only add the leading batch dim.
    return out[None]


def fire_bias_reference(seq_len: int, params: dict, *, eps: float = 1e-6) -> jax.Array:
    """Pure-JAX reference matching the PyTorch forward pass."""
    positions = jnp.arange(seq_len, dtype=jnp.float32)
    rel = positions[:, None] - positions[None, :]
    c = params["c"]
    threshold = jnp.abs(params["L_multiplier"] * params["init_L"])
    pos_norm = jnp.maximum(positions, threshold)[:, None]
    rel_log = jnp.log(jnp.abs(c * rel) + 1.0)
    pn_log = jnp.log(jnp.abs(c * pos_norm) + 1.0) + eps
    nd = rel_log / pn_log                                           # (S, S)
    h = jnp.maximum(nd[..., None] * params["w1"] + params["b1"], 0.0)
    out = h @ params["w2"] + params["b2"]                           # (S, S, H)
    return jnp.transpose(out, (2, 0, 1))[None]


def init_fire_params(key, *, num_heads: int, mlp_width: int,
                     init_c: float = 0.1, init_L: float = 512.0) -> dict:
    """Deterministic parameter init mirroring nn.Linear's uniform(-1/sqrt(fan_in), ...)."""
    k1, k2, k3, k4 = jax.random.split(key, 4)
    bound1 = 1.0 / math.sqrt(1.0)          # fan_in = 1
    bound2 = 1.0 / math.sqrt(mlp_width)    # fan_in = mlp_width
    return {
        "w1": jax.random.uniform(k1, (mlp_width,), jnp.float32, -bound1, bound1),
        "b1": jax.random.uniform(k2, (mlp_width,), jnp.float32, -bound1, bound1),
        # Stored transposed (in_features, out_features) for x @ W convention.
        "w2": jax.random.uniform(k3, (mlp_width, num_heads), jnp.float32, -bound2, bound2),
        "b2": jax.random.uniform(k4, (num_heads,), jnp.float32, -bound2, bound2),
        "c": jnp.asarray(init_c, jnp.float32),
        "init_L": jnp.asarray(init_L, jnp.float32),
        "L_multiplier": jnp.asarray(1.0, jnp.float32),
    }


if __name__ == "__main__":
    num_heads = 4
    mlp_width = 32

    key = jax.random.PRNGKey(0)
    params = init_fire_params(key, num_heads=num_heads, mlp_width=mlp_width)

    # (seq_len, out_dtype, q_tile, k_chunk, rtol, atol)
    cases = [
        (8,   jnp.float32,  None, None, 1e-4, 1e-5),  # single block, single chunk
        (32,  jnp.float32,  None, None, 1e-4, 1e-5),  # multi-step grid (>=2 steps)
        (20,  jnp.float32,  None, None, 1e-4, 1e-5),  # seq_len % 8 != 0 -> padded query axis
        (256, jnp.float32,  None, 128,  1e-4, 1e-5),  # in-kernel key-chunk loop (2 chunks/row)
        (32,  jnp.bfloat16, None, None, 2e-2, 2e-2),  # bf16 output path
    ]
    for seq_len, out_dtype, q_tile, k_chunk, rtol, atol in cases:
        bias = fire_bias_pallas(seq_len, params, num_heads=num_heads,
                                mlp_width=mlp_width, out_dtype=out_dtype,
                                q_tile=q_tile, k_chunk=k_chunk)
        bias = jax.block_until_ready(bias)
        ref = fire_bias_reference(seq_len, params)

        assert bias.shape == (1, num_heads, seq_len, seq_len), bias.shape
        bias_f32 = bias.astype(jnp.float32)
        max_err = jnp.max(jnp.abs(bias_f32 - ref))
        assert jnp.allclose(bias_f32, ref, rtol=rtol, atol=atol), (
            f"S={seq_len} out_dtype={jnp.dtype(out_dtype).name}: max abs diff = {max_err}")

    print("KERNEL_OK")
</pallas_src>

<mosaic_0001>
module attributes {stable_mosaic.version = 11 : i64} {
  func.func @fire_kernel(%arg0: i32, %arg1: memref<3xf32, #tpu.memory_space<smem>>, %arg2: memref<32xf32, #tpu.memory_space<smem>>, %arg3: memref<32xf32, #tpu.memory_space<smem>>, %arg4: memref<128xf32, #tpu.memory_space<smem>>, %arg5: memref<4xf32, #tpu.memory_space<smem>>, %arg6: memref<4x8x8xf32, #tpu.memory_space<vmem>>) attributes {dimension_semantics = [#tpu.dimension_semantics<parallel>], iteration_bounds = array<i64: 1>, scalar_prefetch = 0 : i64, scratch_operands = 0 : i64, tpu.core_type = #tpu.core_type<tc>, window_params = [{transform_indices = @transform_0, window_bounds = array<i64: 3>}, {transform_indices = @transform_1, window_bounds = array<i64: 32>}, {transform_indices = @transform_2, window_bounds = array<i64: 32>}, {transform_indices = @transform_3, window_bounds = array<i64: 128>}, {transform_indices = @transform_4, window_bounds = array<i64: 4>}, {transform_indices = @transform_5, window_bounds = array<i64: 4, 8, 8>}]} {
    %c8_i32 = arith.constant 8 : i32
    %0 = arith.muli %arg0, %c8_i32 : i32
    %1 = tpu.iota {dimensions = array<i32: 0>} : vector<8x1xi32>
    %2 = vector.broadcast %0 : i32 to vector<8x1xi32>
    %3 = arith.addi %1, %2 : vector<8x1xi32>
    %4 = arith.sitofp %3 : vector<8x1xi32> to vector<8x1xf32>
    %c0 = arith.constant 0 : index
    %5 = memref.load %arg1[%c0] : memref<3xf32, #tpu.memory_space<smem>>
    %6 = math.absf %5 : f32
    %c1 = arith.constant 1 : index
    %7 = memref.load %arg1[%c1] : memref<3xf32, #tpu.memory_space<smem>>
    %c2 = arith.constant 2 : index
    %8 = memref.load %arg1[%c2] : memref<3xf32, #tpu.memory_space<smem>>
    %9 = arith.mulf %7, %8 : f32
    %10 = math.absf %9 : f32
    %11 = vector.broadcast %10 : f32 to vector<8x1xf32>
    %12 = arith.maximumf %4, %11 : vector<8x1xf32>
    %13 = vector.broadcast %6 : f32 to vector<8x1xf32>
    %14 = arith.mulf %13, %12 : vector<8x1xf32>
    %cst = arith.constant 1.000000e+00 : f32
    %15 = vector.broadcast %cst : f32 to vector<8x1xf32>
    %16 = arith.addf %14, %15 : vector<8x1xf32>
    %17 = math.log %16 : vector<8x1xf32>
    %cst_0 = arith.constant 9.99999997E-7 : f32
    %18 = vector.broadcast %cst_0 : f32 to vector<8x1xf32>
    %19 = arith.addf %17, %18 : vector<8x1xf32>
    %cst_1 = arith.constant 1.000000e+00 : f32
    %20 = vector.broadcast %cst_1 : f32 to vector<8x1xf32>
    %21 = arith.divf %20, %19 : vector<8x1xf32>
    %22 = tpu.iota {dimensions = array<i32: 1>} : vector<1x8xi32>
    %c0_i32 = arith.constant 0 : i32
    %23 = vector.broadcast %c0_i32 : i32 to vector<1x8xi32>
    %24 = arith.addi %22, %23 : vector<1x8xi32>
    %25 = arith.sitofp %24 : vector<1x8xi32> to vector<1x8xf32>
    %26 = vector.broadcast %4 : vector<8x1xf32> to vector<8x8xf32>
    %27 = vector.broadcast %25 : vector<1x8xf32> to vector<8x8xf32>
    %28 = arith.subf %26, %27 : vector<8x8xf32>
    %29 = math.absf %28 : vector<8x8xf32>
    %30 = vector.broadcast %6 : f32 to vector<8x8xf32>
    %31 = arith.mulf %30, %29 : vector<8x8xf32>
    %cst_2 = arith.constant 1.000000e+00 : f32
    %32 = vector.broadcast %cst_2 : f32 to vector<8x8xf32>
    %33 = arith.addf %31, %32 : vector<8x8xf32>
    %34 = math.log %33 : vector<8x8xf32>
    %35 = vector.broadcast %21 : vector<8x1xf32> to vector<8x8xf32>
    %36 = arith.mulf %34, %35 : vector<8x8xf32>
    %c0_3 = arith.constant 0 : index
    %37 = memref.load %arg2[%c0_3] : memref<32xf32, #tpu.memory_space<smem>>
    %38 = vector.broadcast %37 : f32 to vector<8x8xf32>
    %39 = arith.mulf %36, %38 : vector<8x8xf32>
    %c0_4 = arith.constant 0 : index
    %40 = memref.load %arg3[%c0_4] : memref<32xf32, #tpu.memory_space<smem>>
    %41 = vector.broadcast %40 : f32 to vector<8x8xf32>
    %42 = arith.addf %39, %41 : vector<8x8xf32>
    %cst_5 = arith.constant 0.000000e+00 : f32
    %43 = vector.broadcast %cst_5 : f32 to vector<8x8xf32>
    %44 = arith.maximumf %42, %43 : vector<8x8xf32>
    %c0_6 = arith.constant 0 : index
    %45 = memref.load %arg4[%c0_6] : memref<128xf32, #tpu.memory_space<smem>>
    %46 = vector.broadcast %45 : f32 to vector<8x8xf32>
    %47 = arith.mulf %44, %46 : vector<8x8xf32>
    %c1_7 = arith.constant 1 : index
    %48 = memref.load %arg4[%c1_7] : memref<128xf32, #tpu.memory_space<smem>>
    %49 = vector.broadcast %48 : f32 to vector<8x8xf32>
    %50 = arith.mulf %44, %49 : vector<8x8xf32>
    %c2_8 = arith.constant 2 : index
    %51 = memref.load %arg4[%c2_8] : memref<128xf32, #tpu.memory_space<smem>>
    %52 = vector.broadcast %51 : f32 to vector<8x8xf32>
    %53 = arith.mulf %44, %52 : vector<8x8xf32>
    %c3 = arith.constant 3 : index
    %54 = memref.load %arg4[%c3] : memref<128xf32, #tpu.memory_space<smem>>
    %55 = vector.broadcast %54 : f32 to vector<8x8xf32>
    %56 = arith.mulf %44, %55 : vector<8x8xf32>
    %c1_9 = arith.constant 1 : index
    %57 = memref.load %arg2[%c1_9] : memref<32xf32, #tpu.memory_space<smem>>
    %58 = vector.broadcast %57 : f32 to vector<8x8xf32>
    %59 = arith.mulf %36, %58 : vector<8x8xf32>
    %c1_10 = arith.constant 1 : index
    %60 = memref.load %arg3[%c1_10] : memref<32xf32, #tpu.memory_space<smem>>
    %61 = vector.broadcast %60 : f32 to vector<8x8xf32>
    %62 = arith.addf %59, %61 : vector<8x8xf32>
    %cst_11 = arith.constant 0.000000e+00 : f32
    %63 = vector.broadcast %cst_11 : f32 to vector<8x8xf32>
    %64 = arith.maximumf %62, %63 : vector<8x8xf32>
    %c4 = arith.constant 4 : index
    %65 = memref.load %arg4[%c4] : memref<128xf32, #tpu.memory_space<smem>>
    %66 = vector.broadcast %65 : f32 to vector<8x8xf32>
    %67 = arith.mulf %64, %66 : vector<8x8xf32>
    %68 = arith.addf %47, %67 : vector<8x8xf32>
    %c5 = arith.constant 5 : index
    %69 = memref.load %arg4[%c5] : memref<128xf32, #tpu.memory_space<smem>>
    %70 = vector.broadcast %69 : f32 to vector<8x8xf32>
    %71 = arith.mulf %64, %70 : vector<8x8xf32>
    %72 = arith.addf %50, %71 : vector<8x8xf32>
    %c6 = arith.constant 6 : index
    %73 = memref.load %arg4[%c6] : memref<128xf32, #tpu.memory_space<smem>>
    %74 = vector.broadcast %73 : f32 to vector<8x8xf32>
    %75 = arith.mulf %64, %74 : vector<8x8xf32>
    %76 = arith.addf %53, %75 : vector<8x8xf32>
    %c7 = arith.constant 7 : index
    %77 = memref.load %arg4[%c7] : memref<128xf32, #tpu.memory_space<smem>>
    %78 = vector.broadcast %77 : f32 to vector<8x8xf32>
    %79 = arith.mulf %64, %78 : vector<8x8xf32>
    %80 = arith.addf %56, %79 : vector<8x8xf32>
    %c2_12 = arith.constant 2 : index
    %81 = memref.load %arg2[%c2_12] : memref<32xf32, #tpu.memory_space<smem>>
    %82 = vector.broadcast %81 : f32 to vector<8x8xf32>
    %83 = arith.mulf %36, %82 : vector<8x8xf32>
    %c2_13 = arith.constant 2 : index
    %84 = memref.load %arg3[%c2_13] : memref<32xf32, #tpu.memory_space<smem>>
    %85 = vector.broadcast %84 : f32 to vector<8x8xf32>
    %86 = arith.addf %83, %85 : vector<8x8xf32>
    %cst_14 = arith.constant 0.000000e+00 : f32
    %87 = vector.broadcast %cst_14 : f32 to vector<8x8xf32>
    %88 = arith.maximumf %86, %87 : vector<8x8xf32>
    %c8 = arith.constant 8 : index
    %89 = memref.load %arg4[%c8] : memref<128xf32, #tpu.memory_space<smem>>
    %90 = vector.broadcast %89 : f32 to vector<8x8xf32>
    %91 = arith.mulf %88, %90 : vector<8x8xf32>
    %92 = arith.addf %68, %91 : vector<8x8xf32>
    %c9 = arith.constant 9 : index
    %93 = memref.load %arg4[%c9] : memref<128xf32, #tpu.memory_space<smem>>
    %94 = vector.broadcast %93 : f32 to vector<8x8xf32>
    %95 = arith.mulf %88, %94 : vector<8x8xf32>
    %96 = arith.addf %72, %95 : vector<8x8xf32>
    %c10 = arith.constant 10 : index
    %97 = memref.load %arg4[%c10] : memref<128xf32, #tpu.memory_space<smem>>
    %98 = vector.broadcast %97 : f32 to vector<8x8xf32>
    %99 = arith.mulf %88, %98 : vector<8x8xf32>
    %100 = arith.addf %76, %99 : vector<8x8xf32>
    %c11 = arith.constant 11 : index
    %101 = memref.load %arg4[%c11] : memref<128xf32, #tpu.memory_space<smem>>
    %102 = vector.broadcast %101 : f32 to vector<8x8xf32>
    %103 = arith.mulf %88, %102 : vector<8x8xf32>
    %104 = arith.addf %80, %103 : vector<8x8xf32>
    %c3_15 = arith.constant 3 : index
    %105 = memref.load %arg2[%c3_15] : memref<32xf32, #tpu.memory_space<smem>>
    %106 = vector.broadcast %105 : f32 to vector<8x8xf32>
    %107 = arith.mulf %36, %106 : vector<8x8xf32>
    %c3_16 = arith.constant 3 : index
    %108 = memref.load %arg3[%c3_16] : memref<32xf32, #tpu.memory_space<smem>>
    %109 = vector.broadcast %108 : f32 to vector<8x8xf32>
    %110 = arith.addf %107, %109 : vector<8x8xf32>
    %cst_17 = arith.constant 0.000000e+00 : f32
    %111 = vector.broadcast %cst_17 : f32 to vector<8x8xf32>
    %112 = arith.maximumf %110, %111 : vector<8x8xf32>
    %c12 = arith.constant 12 : index
    %113 = memref.load %arg4[%c12] : memref<128xf32, #tpu.memory_space<smem>>
    %114 = vector.broadcast %113 : f32 to vector<8x8xf32>
    %115 = arith.mulf %112, %114 : vector<8x8xf32>
    %116 = arith.addf %92, %115 : vector<8x8xf32>
    %c13 = arith.constant 13 : index
    %117 = memref.load %arg4[%c13] : memref<128xf32, #tpu.memory_space<smem>>
    %118 = vector.broadcast %117 : f32 to vector<8x8xf32>
    %119 = arith.mulf %112, %118 : vector<8x8xf32>
    %120 = arith.addf %96, %119 : vector<8x8xf32>
    %c14 = arith.constant 14 : index
    %121 = memref.load %arg4[%c14] : memref<128xf32, #tpu.memory_space<smem>>
    %122 = vector.broadcast %121 : f32 to vector<8x8xf32>
    %123 = arith.mulf %112, %122 : vector<8x8xf32>
    %124 = arith.addf %100, %123 : vector<8x8xf32>
    %c15 = arith.constant 15 : index
    %125 = memref.load %arg4[%c15] : memref<128xf32, #tpu.memory_space<smem>>
    %126 = vector.broadcast %125 : f32 to vector<8x8xf32>
    %127 = arith.mulf %112, %126 : vector<8x8xf32>
    %128 = arith.addf %104, %127 : vector<8x8xf32>
    %c4_18 = arith.constant 4 : index
    %129 = memref.load %arg2[%c4_18] : memref<32xf32, #tpu.memory_space<smem>>
    %130 = vector.broadcast %129 : f32 to vector<8x8xf32>
    %131 = arith.mulf %36, %130 : vector<8x8xf32>
    %c4_19 = arith.constant 4 : index
    %132 = memref.load %arg3[%c4_19] : memref<32xf32, #tpu.memory_space<smem>>
    %133 = vector.broadcast %132 : f32 to vector<8x8xf32>
    %134 = arith.addf %131, %133 : vector<8x8xf32>
    %cst_20 = arith.constant 0.000000e+00 : f32
    %135 = vector.broadcast %cst_20 : f32 to vector<8x8xf32>
    %136 = arith.maximumf %134, %135 : vector<8x8xf32>
    %c16 = arith.constant 16 : index
    %137 = memref.load %arg4[%c16] : memref<128xf32, #tpu.memory_space<smem>>
    %138 = vector.broadcast %137 : f32 to vector<8x8xf32>
    %139 = arith.mulf %136, %138 : vector<8x8xf32>
    %140 = arith.addf %116, %139 : vector<8x8xf32>
    %c17 = arith.constant 17 : index
    %141 = memref.load %arg4[%c17] : memref<128xf32, #tpu.memory_space<smem>>
    %142 = vector.broadcast %141 : f32 to vector<8x8xf32>
    %143 = arith.mulf %136, %142 : vector<8x8xf32>
    %144 = arith.addf %120, %143 : vector<8x8xf32>
    %c18 = arith.constant 18 : index
    %145 = memref.load %arg4[%c18] : memref<128xf32, #tpu.memory_space<smem>>
    %146 = vector.broadcast %145 : f32 to vector<8x8xf32>
    %147 = arith.mulf %136, %146 : vector<8x8xf32>
    %148 = arith.addf %124, %147 : vector<8x8xf32>
    %c19 = arith.constant 19 : index
    %149 = memref.load %arg4[%c19] : memref<128xf32, #tpu.memory_space<smem>>
    %150 = vector.broadcast %149 : f32 to vector<8x8xf32>
    %151 = arith.mulf %136, %150 : vector<8x8xf32>
    %152 = arith.addf %128, %151 : vector<8x8xf32>
    %c5_21 = arith.constant 5 : index
    %153 = memref.load %arg2[%c5_21] : memref<32xf32, #tpu.memory_space<smem>>
    %154 = vector.broadcast %153 : f32 to vector<8x8xf32>
    %155 = arith.mulf %36, %154 : vector<8x8xf32>
    %c5_22 = arith.constant 5 : index
    %156 = memref.load %arg3[%c5_22] : memref<32xf32, #tpu.memory_space<smem>>
    %157 = vector.broadcast %156 : f32 to vector<8x8xf32>
    %158 = arith.addf %155, %157 : vector<8x8xf32>
    %cst_23 = arith.constant 0.000000e+00 : f32
    %159 = vector.broadcast %cst_23 : f32 to vector<8x8xf32>
    %160 = arith.maximumf %158, %159 : vector<8x8xf32>
    %c20 = arith.constant 20 : index
    %161 = memref.load %arg4[%c20] : memref<128xf32, #tpu.memory_space<smem>>
    %162 = vector.broadcast %161 : f32 to vector<8x8xf32>
    %163 = arith.mulf %160, %162 : vector<8x8xf32>
    %164 = arith.addf %140, %163 : vector<8x8xf32>
    %c21 = arith.constant 21 : index
    %165 = memref.load %arg4[%c21] : memref<128xf32, #tpu.memory_space<smem>>
    %166 = vector.broadcast %165 : f32 to vector<8x8xf32>
    %167 = arith.mulf %160, %166 : vector<8x8xf32>
    %168 = arith.addf %144, %167 : vector<8x8xf32>
    %c22 = arith.constant 22 : index
    %169 = memref.load %arg4[%c22] : memref<128xf32, #tpu.memory_space<smem>>
    %170 = vector.broadcast %169 : f32 to vector<8x8xf32>
    %171 = arith.mulf %160, %170 : vector<8x8xf32>
    %172 = arith.addf %148, %171 : vector<8x8xf32>
    %c23 = arith.constant 23 : index
    %173 = memref.load %arg4[%c23] : memref<128xf32, #tpu.memory_space<smem>>
    %174 = vector.broadcast %173 : f32 to vector<8x8xf32>
    %175 = arith.mulf %160, %174 : vector<8x8xf32>
    %176 = arith.addf %152, %175 : vector<8x8xf32>
    %c6_24 = arith.constant 6 : index
    %177 = memref.load %arg2[%c6_24] : memref<32xf32, #tpu.memory_space<smem>>
    %178 = vector.broadcast %177 : f32 to vector<8x8xf32>
    %179 = arith.mulf %36, %178 : vector<8x8xf32>
    %c6_25 = arith.constant 6 : index
    %180 = memref.load %arg3[%c6_25] : memref<32xf32, #tpu.memory_space<smem>>
    %181 = vector.broadcast %180 : f32 to vector<8x8xf32>
    %182 = arith.addf %179, %181 : vector<8x8xf32>
    %cst_26 = arith.constant 0.000000e+00 : f32
    %183 = vector.broadcast %cst_26 : f32 to vector<8x8xf32>
    %184 = arith.maximumf %182, %183 : vector<8x8xf32>
    %c24 = arith.constant 24 : index
    %185 = memref.load %arg4[%c24] : memref<128xf32, #tpu.memory_space<smem>>
    %186 = vector.broadcast %185 : f32 to vector<8x8xf32>
    %187 = arith.mulf %184, %186 : vector<8x8xf32>
    %188 = arith.addf %164, %187 : vector<8x8xf32>
    %c25 = arith.constant 25 : index
    %189 = memref.load %arg4[%c25] : memref<128xf32, #tpu.memory_space<smem>>
    %190 = vector.broadcast %189 : f32 to vector<8x8xf32>
    %191 = arith.mulf %184, %190 : vector<8x8xf32>
    %192 = arith.addf %168, %191 : vector<8x8xf32>
    %c26 = arith.constant 26 : index
    %193 = memref.load %arg4[%c26] : memref<128xf32, #tpu.memory_space<smem>>
    %194 = vector.broadcast %193 : f32 to vector<8x8xf32>
    %195 = arith.mulf %184, %194 : vector<8x8xf32>
    %196 = arith.addf %172, %195 : vector<8x8xf32>
    %c27 = arith.constant 27 : index
    %197 = memref.load %arg4[%c27] : memref<128xf32, #tpu.memory_space<smem>>
    %198 = vector.broadcast %197 : f32 to vector<8x8xf32>
    %199 = arith.mulf %184, %198 : vector<8x8xf32>
    %200 = arith.addf %176, %199 : vector<8x8xf32>
    %c7_27 = arith.constant 7 : index
    %201 = memref.load %arg2[%c7_27] : memref<32xf32, #tpu.memory_space<smem>>
    %202 = vector.broadcast %201 : f32 to vector<8x8xf32>
    %203 = arith.mulf %36, %202 : vector<8x8xf32>
    %c7_28 = arith.constant 7 : index
    %204 = memref.load %arg3[%c7_28] : memref<32xf32, #tpu.memory_space<smem>>
    %205 = vector.broadcast %204 : f32 to vector<8x8xf32>
    %206 = arith.addf %203, %205 : vector<8x8xf32>
    %cst_29 = arith.constant 0.000000e+00 : f32
    %207 = vector.broadcast %cst_29 : f32 to vector<8x8xf32>
    %208 = arith.maximumf %206, %207 : vector<8x8xf32>
    %c28 = arith.constant 28 : index
    %209 = memref.load %arg4[%c28] : memref<128xf32, #tpu.memory_space<smem>>
    %210 = vector.broadcast %209 : f32 to vector<8x8xf32>
    %211 = arith.mulf %208, %210 : vector<8x8xf32>
    %212 = arith.addf %188, %211 : vector<8x8xf32>
    %c29 = arith.constant 29 : index
    %213 = memref.load %arg4[%c29] : memref<128xf32, #tpu.memory_space<smem>>
    %214 = vector.broadcast %213 : f32 to vector<8x8xf32>
    %215 = arith.mulf %208, %214 : vector<8x8xf32>
    %216 = arith.addf %192, %215 : vector<8x8xf32>
    %c30 = arith.constant 30 : index
    %217 = memref.load %arg4[%c30] : memref<128xf32, #tpu.memory_space<smem>>
    %218 = vector.broadcast %217 : f32 to vector<8x8xf32>
    %219 = arith.mulf %208, %218 : vector<8x8xf32>
    %220 = arith.addf %196, %219 : vector<8x8xf32>
    %c31 = arith.constant 31 : index
    %221 = memref.load %arg4[%c31] : memref<128xf32, #tpu.memory_space<smem>>
    %222 = vector.broadcast %221 : f32 to vector<8x8xf32>
    %223 = arith.mulf %208, %222 : vector<8x8xf32>
    %224 = arith.addf %200, %223 : vector<8x8xf32>
    %c8_30 = arith.constant 8 : index
    %225 = memref.load %arg2[%c8_30] : memref<32xf32, #tpu.memory_space<smem>>
    %226 = vector.broadcast %225 : f32 to vector<8x8xf32>
    %227 = arith.mulf %36, %226 : vector<8x8xf32>
    %c8_31 = arith.constant 8 : index
    %228 = memref.load %arg3[%c8_31] : memref<32xf32, #tpu.memory_space<smem>>
    %229 = vector.broadcast %228 : f32 to vector<8x8xf32>
    %230 = arith.addf %227, %229 : vector<8x8xf32>
    %cst_32 = arith.constant 0.000000e+00 : f32
    %231 = vector.broadcast %cst_32 : f32 to vector<8x8xf32>
    %232 = arith.maximumf %230, %231 : vector<8x8xf32>
    %c32 = arith.constant 32 : index
    %233 = memref.load %arg4[%c32] : memref<128xf32, #tpu.memory_space<smem>>
    %234 = vector.broadcast %233 : f32 to vector<8x8xf32>
    %235 = arith.mulf %232, %234 : vector<8x8xf32>
    %236 = arith.addf %212, %235 : vector<8x8xf32>
    %c33 = arith.constant 33 : index
    %237 = memref.load %arg4[%c33] : memref<128xf32, #tpu.memory_space<smem>>
    %238 = vector.broadcast %237 : f32 to vector<8x8xf32>
    %239 = arith.mulf %232, %238 : vector<8x8xf32>
    %240 = arith.addf %216, %239 : vector<8x8xf32>
    %c34 = arith.constant 34 : index
    %241 = memref.load %arg4[%c34] : memref<128xf32, #tpu.memory_space<smem>>
    %242 = vector.broadcast %241 : f32 to vector<8x8xf32>
    %243 = arith.mulf %232, %242 : vector<8x8xf32>
    %244 = arith.addf %220, %243 : vector<8x8xf32>
    %c35 = arith.constant 35 : index
    %245 = memref.load %arg4[%c35] : memref<128xf32, #tpu.memory_space<smem>>
    %246 = vector.broadcast %245 : f32 to vector<8x8xf32>
    %247 = arith.mulf %232, %246 : vector<8x8xf32>
    %248 = arith.addf %224, %247 : vector<8x8xf32>
    %c9_33 = arith.constant 9 : index
    %249 = memref.load %arg2[%c9_33] : memref<32xf32, #tpu.memory_space<smem>>
    %250 = vector.broadcast %249 : f32 to vector<8x8xf32>
    %251 = arith.mulf %36, %250 : vector<8x8xf32>
    %c9_34 = arith.constant 9 : index
    %252 = memref.load %arg3[%c9_34] : memref<32xf32, #tpu.memory_space<smem>>
    %253 = vector.broadcast %252 : f32 to vector<8x8xf32>
    %254 = arith.addf %251, %253 : vector<8x8xf32>
    %cst_35 = arith.constant 0.000000e+00 : f32
    %255 = vector.broadcast %cst_35 : f32 to vector<8x8xf32>
    %256 = arith.maximumf %254, %255 : vector<8x8xf32>
    %c36 = arith.constant 36 : index
    %257 = memref.load %arg4[%c36] : memref<128xf32, #tpu.memory_space<smem>>
    %258 = vector.broadcast %257 : f32 to vector<8x8xf32>
    %259 = arith.mulf %256, %258 : vector<8x8xf32>
    %260 = arith.addf %236, %259 : vector<8x8xf32>
    %c37 = arith.constant 37 : index
    %261 = memref.load %arg4[%c37] : memref<128xf32, #tpu.memory_space<smem>>
    %262 = vector.broadcast %261 : f32 to vector<8x8xf32>
    %263 = arith.mulf %256, %262 : vector<8x8xf32>
    %264 = arith.addf %240, %263 : vector<8x8xf32>
    %c38 = arith.constant 38 : index
    %265 = memref.load %arg4[%c38] : memref<128xf32, #tpu.memory_space<smem>>
    %266 = vector.broadcast %265 : f32 to vector<8x8xf32>
    %267 = arith.mulf %256, %266 : vector<8x8xf32>
    %268 = arith.addf %244, %267 : vector<8x8xf32>
    %c39 = arith.constant 39 : index
    %269 = memref.load %arg4[%c39] : memref<128xf32, #tpu.memory_space<smem>>
    %270 = vector.broadcast %269 : f32 to vector<8x8xf32>
    %271 = arith.mulf %256, %270 : vector<8x8xf32>
    %272 = arith.addf %248, %271 : vector<8x8xf32>
    %c10_36 = arith.constant 10 : index
    %273 = memref.load %arg2[%c10_36] : memref<32xf32, #tpu.memory_space<smem>>
    %274 = vector.broadcast %273 : f32 to vector<8x8xf32>
    %275 = arith.mulf %36, %274 : vector<8x8xf32>
    %c10_37 = arith.constant 10 : index
    %276 = memref.load %arg3[%c10_37] : memref<32xf32, #tpu.memory_space<smem>>
    %277 = vector.broadcast %276 : f32 to vector<8x8xf32>
    %278 = arith.addf %275, %277 : vector<8x8xf32>
    %cst_38 = arith.constant 0.000000e+00 : f32
    %279 = vector.broadcast %cst_38 : f32 to vector<8x8xf32>
    %280 = arith.maximumf %278, %279 : vector<8x8xf32>
    %c40 = arith.constant 40 : index
    %281 = memref.load %arg4[%c40] : memref<128xf32, #tpu.memory_space<smem>>
    %282 = vector.broadcast %281 : f32 to vector<8x8xf32>
    %283 = arith.mulf %280, %282 : vector<8x8xf32>
    %284 = arith.addf %260, %283 : vector<8x8xf32>
    %c41 = arith.constant 41 : index
    %285 = memref.load %arg4[%c41] : memref<128xf32, #tpu.memory_space<smem>>
    %286 = vector.broadcast %285 : f32 to vector<8x8xf32>
    %287 = arith.mulf %280, %286 : vector<8x8xf32>
    %288 = arith.addf %264, %287 : vector<8x8xf32>
    %c42 = arith.constant 42 : index
    %289 = memref.load %arg4[%c42] : memref<128xf32, #tpu.memory_space<smem>>
    %290 = vector.broadcast %289 : f32 to vector<8x8xf32>
    %291 = arith.mulf %280, %290 : vector<8x8xf32>
    %292 = arith.addf %268, %291 : vector<8x8xf32>
    %c43 = arith.constant 43 : index
    %293 = memref.load %arg4[%c43] : memref<128xf32, #tpu.memory_space<smem>>
    %294 = vector.broadcast %293 : f32 to vector<8x8xf32>
    %295 = arith.mulf %280, %294 : vector<8x8xf32>
    %296 = arith.addf %272, %295 : vector<8x8xf32>
    %c11_39 = arith.constant 11 : index
    %297 = memref.load %arg2[%c11_39] : memref<32xf32, #tpu.memory_space<smem>>
    %298 = vector.broadcast %297 : f32 to vector<8x8xf32>
    %299 = arith.mulf %36, %298 : vector<8x8xf32>
    %c11_40 = arith.constant 11 : index
    %300 = memref.load %arg3[%c11_40] : memref<32xf32, #tpu.memory_space<smem>>
    %301 = vector.broadcast %300 : f32 to vector<8x8xf32>
    %302 = arith.addf %299, %301 : vector<8x8xf32>
    %cst_41 = arith.constant 0.000000e+00 : f32
    %303 = vector.broadcast %cst_41 : f32 to vector<8x8xf32>
    %304 = arith.maximumf %302, %303 : vector<8x8xf32>
    %c44 = arith.constant 44 : index
    %305 = memref.load %arg4[%c44] : memref<128xf32, #tpu.memory_space<smem>>
    %306 = vector.broadcast %305 : f32 to vector<8x8xf32>
    %307 = arith.mulf %304, %306 : vector<8x8xf32>
    %308 = arith.addf %284, %307 : vector<8x8xf32>
    %c45 = arith.constant 45 : index
    %309 = memref.load %arg4[%c45] : memref<128xf32, #tpu.memory_space<smem>>
    %310 = vector.broadcast %309 : f32 to vector<8x8xf32>
    %311 = arith.mulf %304, %310 : vector<8x8xf32>
    %312 = arith.addf %288, %311 : vector<8x8xf32>
    %c46 = arith.constant 46 : index
    %313 = memref.load %arg4[%c46] : memref<128xf32, #tpu.memory_space<smem>>
    %314 = vector.broadcast %313 : f32 to vector<8x8xf32>
    %315 = arith.mulf %304, %314 : vector<8x8xf32>
    %316 = arith.addf %292, %315 : vector<8x8xf32>
    %c47 = arith.constant 47 : index
    %317 = memref.load %arg4[%c47] : memref<128xf32, #tpu.memory_space<smem>>
    %318 = vector.broadcast %317 : f32 to vector<8x8xf32>
    %319 = arith.mulf %304, %318 : vector<8x8xf32>
    %320 = arith.addf %296, %319 : vector<8x8xf32>
    %c12_42 = arith.constant 12 : index
    %321 = memref.load %arg2[%c12_42] : memref<32xf32, #tpu.memory_space<smem>>
    %322 = vector.broadcast %321 : f32 to vector<8x8xf32>
    %323 = arith.mulf %36, %322 : vector<8x8xf32>
    %c12_43 = arith.constant 12 : index
    %324 = memref.load %arg3[%c12_43] : memref<32xf32, #tpu.memory_space<smem>>
    %325 = vector.broadcast %324 : f32 to vector<8x8xf32>
    %326 = arith.addf %323, %325 : vector<8x8xf32>
    %cst_44 = arith.constant 0.000000e+00 : f32
    %327 = vector.broadcast %cst_44 : f32 to vector<8x8xf32>
    %328 = arith.maximumf %326, %327 : vector<8x8xf32>
    %c48 = arith.constant 48 : index
    %329 = memref.load %arg4[%c48] : memref<128xf32, #tpu.memory_space<smem>>
    %330 = vector.broadcast %329 : f32 to vector<8x8xf32>
    %331 = arith.mulf %328, %330 : vector<8x8xf32>
    %332 = arith.addf %308, %331 : vector<8x8xf32>
    %c49 = arith.constant 49 : index
    %333 = memref.load %arg4[%c49] : memref<128xf32, #tpu.memory_space<smem>>
    %334 = vector.broadcast %333 : f32 to vector<8x8xf32>
    %335 = arith.mulf %328, %334 : vector<8x8xf32>
    %336 = arith.addf %312, %335 : vector<8x8xf32>
    %c50 = arith.constant 50 : index
    %337 = memref.load %arg4[%c50] : memref<128xf32, #tpu.memory_space<smem>>
    %338 = vector.broadcast %337 : f32 to vector<8x8xf32>
    %339 = arith.mulf %328, %338 : vector<8x8xf32>
    %340 = arith.addf %316, %339 : vector<8x8xf32>
    %c51 = arith.constant 51 : index
    %341 = memref.load %arg4[%c51] : memref<128xf32, #tpu.memory_space<smem>>
    %342 = vector.broadcast %341 : f32 to vector<8x8xf32>
    %343 = arith.mulf %328, %342 : vector<8x8xf32>
    %344 = arith.addf %320, %343 : vector<8x8xf32>
    %c13_45 = arith.constant 13 : index
    %345 = memref.load %arg2[%c13_45] : memref<32xf32, #tpu.memory_space<smem>>
    %346 = vector.broadcast %345 : f32 to vector<8x8xf32>
    %347 = arith.mulf %36, %346 : vector<8x8xf32>
    %c13_46 = arith.constant 13 : index
    %348 = memref.load %arg3[%c13_46] : memref<32xf32, #tpu.memory_space<smem>>
    %349 = vector.broadcast %348 : f32 to vector<8x8xf32>
    %350 = arith.addf %347, %349 : vector<8x8xf32>
    %cst_47 = arith.constant 0.000000e+00 : f32
    %351 = vector.broadcast %cst_47 : f32 to vector<8x8xf32>
    %352 = arith.maximumf %350, %351 : vector<8x8xf32>
    %c52 = arith.constant 52 : index
    %353 = memref.load %arg4[%c52] : memref<128xf32, #tpu.memory_space<smem>>
    %354 = vector.broadcast %353 : f32 to vector<8x8xf32>
    %355 = arith.mulf %352, %354 : vector<8x8xf32>
    %356 = arith.addf %332, %355 : vector<8x8xf32>
    %c53 = arith.constant 53 : index
    %357 = memref.load %arg4[%c53] : memref<128xf32, #tpu.memory_space<smem>>
    %358 = vector.broadcast %357 : f32 to vector<8x8xf32>
    %359 = arith.mulf %352, %358 : vector<8x8xf32>
    %360 = arith.addf %336, %359 : vector<8x8xf32>
    %c54 = arith.constant 54 : index
    %361 = memref.load %arg4[%c54] : memref<128xf32, #tpu.memory_space<smem>>
    %362 = vector.broadcast %361 : f32 to vector<8x8xf32>
    %363 = arith.mulf %352, %362 : vector<8x8xf32>
    %364 = arith.addf %340, %363 : vector<8x8xf32>
    %c55 = arith.constant 55 : index
    %365 = memref.load %arg4[%c55] : memref<128xf32, #tpu.memory_space<smem>>
    %366 = vector.broadcast %365 : f32 to vector<8x8xf32>
    %367 = arith.mulf %352, %366 : vector<8x8xf32>
    %368 = arith.addf %344, %367 : vector<8x8xf32>
    %c14_48 = arith.constant 14 : index
    %369 = memref.load %arg2[%c14_48] : memref<32xf32, #tpu.memory_space<smem>>
    %370 = vector.broadcast %369 : f32 to vector<8x8xf32>
    %371 = arith.mulf %36, %370 : vector<8x8xf32>
    %c14_49 = arith.constant 14 : index
    %372 = memref.load %arg3[%c14_49] : memref<32xf32, #tpu.memory_space<smem>>
    %373 = vector.broadcast %372 : f32 to vector<8x8xf32>
    %374 = arith.addf %371, %373 : vector<8x8xf32>
    %cst_50 = arith.constant 0.000000e+00 : f32
    %375 = vector.broadcast %cst_50 : f32 to vector<8x8xf32>
    %376 = arith.maximumf %374, %375 : vector<8x8xf32>
    %c56 = arith.constant 56 : index
    %377 = memref.load %arg4[%c56] : memref<128xf32, #tpu.memory_space<smem>>
    %378 = vector.broadcast %377 : f32 to vector<8x8xf32>
    %379 = arith.mulf %376, %378 : vector<8x8xf32>
    %380 = arith.addf %356, %379 : vector<8x8xf32>
    %c57 = arith.constant 57 : index
    %381 = memref.load %arg4[%c57] : memref<128xf32, #tpu.memory_space<smem>>
    %382 = vector.broadcast %381 : f32 to vector<8x8xf32>
    %383 = arith.mulf %376, %382 : vector<8x8xf32>
    %384 = arith.addf %360, %383 : vector<8x8xf32>
    %c58 = arith.constant 58 : index
    %385 = memref.load %arg4[%c58] : memref<128xf32, #tpu.memory_space<smem>>
    %386 = vector.broadcast %385 : f32 to vector<8x8xf32>
    %387 = arith.mulf %376, %386 : vector<8x8xf32>
    %388 = arith.addf %364, %387 : vector<8x8xf32>
    %c59 = arith.constant 59 : index
    %389 = memref.load %arg4[%c59] : memref<128xf32, #tpu.memory_space<smem>>
    %390 = vector.broadcast %389 : f32 to vector<8x8xf32>
    %391 = arith.mulf %376, %390 : vector<8x8xf32>
    %392 = arith.addf %368, %391 : vector<8x8xf32>
    %c15_51 = arith.constant 15 : index
    %393 = memref.load %arg2[%c15_51] : memref<32xf32, #tpu.memory_space<smem>>
    %394 = vector.broadcast %393 : f32 to vector<8x8xf32>
    %395 = arith.mulf %36, %394 : vector<8x8xf32>
    %c15_52 = arith.constant 15 : index
    %396 = memref.load %arg3[%c15_52] : memref<32xf32, #tpu.memory_space<smem>>
    %397 = vector.broadcast %396 : f32 to vector<8x8xf32>
    %398 = arith.addf %395, %397 : vector<8x8xf32>
    %cst_53 = arith.constant 0.000000e+00 : f32
    %399 = vector.broadcast %cst_53 : f32 to vector<8x8xf32>
    %400 = arith.maximumf %398, %399 : vector<8x8xf32>
    %c60 = arith.constant 60 : index
    %401 = memref.load %arg4[%c60] : memref<128xf32, #tpu.memory_space<smem>>
    %402 = vector.broadcast %401 : f32 to vector<8x8xf32>
    %403 = arith.mulf %400, %402 : vector<8x8xf32>
    %404 = arith.addf %380, %403 : vector<8x8xf32>
    %c61 = arith.constant 61 : index
    %405 = memref.load %arg4[%c61] : memref<128xf32, #tpu.memory_space<smem>>
    %406 = vector.broadcast %405 : f32 to vector<8x8xf32>
    %407 = arith.mulf %400, %406 : vector<8x8xf32>
    %408 = arith.addf %384, %407 : vector<8x8xf32>
    %c62 = arith.constant 62 : index
    %409 = memref.load %arg4[%c62] : memref<128xf32, #tpu.memory_space<smem>>
    %410 = vector.broadcast %409 : f32 to vector<8x8xf32>
    %411 = arith.mulf %400, %410 : vector<8x8xf32>
    %412 = arith.addf %388, %411 : vector<8x8xf32>
    %c63 = arith.constant 63 : index
    %413 = memref.load %arg4[%c63] : memref<128xf32, #tpu.memory_space<smem>>
    %414 = vector.broadcast %413 : f32 to vector<8x8xf32>
    %415 = arith.mulf %400, %414 : vector<8x8xf32>
    %416 = arith.addf %392, %415 : vector<8x8xf32>
    %c16_54 = arith.constant 16 : index
    %417 = memref.load %arg2[%c16_54] : memref<32xf32, #tpu.memory_space<smem>>
    %418 = vector.broadcast %417 : f32 to vector<8x8xf32>
    %419 = arith.mulf %36, %418 : vector<8x8xf32>
    %c16_55 = arith.constant 16 : index
    %420 = memref.load %arg3[%c16_55] : memref<32xf32, #tpu.memory_space<smem>>
    %421 = vector.broadcast %420 : f32 to vector<8x8xf32>
    %422 = arith.addf %419, %421 : vector<8x8xf32>
    %cst_56 = arith.constant 0.000000e+00 : f32
    %423 = vector.broadcast %cst_56 : f32 to vector<8x8xf32>
    %424 = arith.maximumf %422, %423 : vector<8x8xf32>
    %c64 = arith.constant 64 : index
    %425 = memref.load %arg4[%c64] : memref<128xf32, #tpu.memory_space<smem>>
    %426 = vector.broadcast %425 : f32 to vector<8x8xf32>
    %427 = arith.mulf %424, %426 : vector<8x8xf32>
    %428 = arith.addf %404, %427 : vector<8x8xf32>
    %c65 = arith.constant 65 : index
    %429 = memref.load %arg4[%c65] : memref<128xf32, #tpu.memory_space<smem>>
    %430 = vector.broadcast %429 : f32 to vector<8x8xf32>
    %431 = arith.mulf %424, %430 : vector<8x8xf32>
    %432 = arith.addf %408, %431 : vector<8x8xf32>
    %c66 = arith.constant 66 : index
    %433 = memref.load %arg4[%c66] : memref<128xf32, #tpu.memory_space<smem>>
    %434 = vector.broadcast %433 : f32 to vector<8x8xf32>
    %435 = arith.mulf %424, %434 : vector<8x8xf32>
    %436 = arith.addf %412, %435 : vector<8x8xf32>
    %c67 = arith.constant 67 : index
    %437 = memref.load %arg4[%c67] : memref<128xf32, #tpu.memory_space<smem>>
    %438 = vector.broadcast %437 : f32 to vector<8x8xf32>
    %439 = arith.mulf %424, %438 : vector<8x8xf32>
    %440 = arith.addf %416, %439 : vector<8x8xf32>
    %c17_57 = arith.constant 17 : index
    %441 = memref.load %arg2[%c17_57] : memref<32xf32, #tpu.memory_space<smem>>
    %442 = vector.broadcast %441 : f32 to vector<8x8xf32>
    %443 = arith.mulf %36, %442 : vector<8x8xf32>
    %c17_58 = arith.constant 17 : index
    %444 = memref.load %arg3[%c17_58] : memref<32xf32, #tpu.memory_space<smem>>
    %445 = vector.broadcast %444 : f32 to vector<8x8xf32>
    %446 = arith.addf %443, %445 : vector<8x8xf32>
    %cst_59 = arith.constant 0.000000e+00 : f32
    %447 = vector.broadcast %cst_59 : f32 to vector<8x8xf32>
    %448 = arith.maximumf %446, %447 : vector<8x8xf32>
    %c68 = arith.constant 68 : index
    %449 = memref.load %arg4[%c68] : memref<128xf32, #tpu.memory_space<smem>>
    %450 = vector.broadcast %449 : f32 to vector<8x8xf32>
    %451 = arith.mulf %448, %450 : vector<8x8xf32>
    %452 = arith.addf %428, %451 : vector<8x8xf32>
    %c69 = arith.constant 69 : index
    %453 = memref.load %arg4[%c69] : memref<128xf32, #tpu.memory_space<smem>>
    %454 = vector.broadcast %453 : f32 to vector<8x8xf32>
    %455 = arith.mulf %448, %454 : vector<8x8xf32>
    %456 = arith.addf %432, %455 : vector<8x8xf32>
    %c70 = arith.constant 70 : index
    %457 = memref.load %arg4[%c70] : memref<128xf32, #tpu.memory_space<smem>>
    %458 = vector.broadcast %457 : f32 to vector<8x8xf32>
    %459 = arith.mulf %448, %458 : vector<8x8xf32>
    %460 = arith.addf %436, %459 : vector<8x8xf32>
    %c71 = arith.constant 71 : index
    %461 = memref.load %arg4[%c71] : memref<128xf32, #tpu.memory_space<smem>>
    %462 = vector.broadcast %461 : f32 to vector<8x8xf32>
    %463 = arith.mulf %448, %462 : vector<8x8xf32>
    %464 = arith.addf %440, %463 : vector<8x8xf32>
    %c18_60 = arith.constant 18 : index
    %465 = memref.load %arg2[%c18_60] : memref<32xf32, #tpu.memory_space<smem>>
    %466 = vector.broadcast %465 : f32 to vector<8x8xf32>
    %467 = arith.mulf %36, %466 : vector<8x8xf32>
    %c18_61 = arith.constant 18 : index
    %468 = memref.load %arg3[%c18_61] : memref<32xf32, #tpu.memory_space<smem>>
    %469 = vector.broadcast %468 : f32 to vector<8x8xf32>
    %470 = arith.addf %467, %469 : vector<8x8xf32>
    %cst_62 = arith.constant 0.000000e+00 : f32
    %471 = vector.broadcast %cst_62 : f32 to vector<8x8xf32>
    %472 = arith.maximumf %470, %471 : vector<8x8xf32>
    %c72 = arith.constant 72 : index
    %473 = memref.load %arg4[%c72] : memref<128xf32, #tpu.memory_space<smem>>
    %474 = vector.broadcast %473 : f32 to vector<8x8xf32>
    %475 = arith.mulf %472, %474 : vector<8x8xf32>
    %476 = arith.addf %452, %475 : vector<8x8xf32>
    %c73 = arith.constant 73 : index
    %477 = memref.load %arg4[%c73] : memref<128xf32, #tpu.memory_space<smem>>
    %478 = vector.broadcast %477 : f32 to vector<8x8xf32>
    %479 = arith.mulf %472, %478 : vector<8x8xf32>
    %480 = arith.addf %456, %479 : vector<8x8xf32>
    %c74 = arith.constant 74 : index
    %481 = memref.load %arg4[%c74] : memref<128xf32, #tpu.memory_space<smem>>
    %482 = vector.broadcast %481 : f32 to vector<8x8xf32>
    %483 = arith.mulf %472, %482 : vector<8x8xf32>
    %484 = arith.addf %460, %483 : vector<8x8xf32>
    %c75 = arith.constant 75 : index
    %485 = memref.load %arg4[%c75] : memref<128xf32, #tpu.memory_space<smem>>
    %486 = vector.broadcast %485 : f32 to vector<8x8xf32>
    %487 = arith.mulf %472, %486 : vector<8x8xf32>
    %488 = arith.addf %464, %487 : vector<8x8xf32>
    %c19_63 = arith.constant 19 : index
    %489 = memref.load %arg2[%c19_63] : memref<32xf32, #tpu.memory_space<smem>>
    %490 = vector.broadcast %489 : f32 to vector<8x8xf32>
    %491 = arith.mulf %36, %490 : vector<8x8xf32>
    %c19_64 = arith.constant 19 : index
    %492 = memref.load %arg3[%c19_64] : memref<32xf32, #tpu.memory_space<smem>>
    %493 = vector.broadcast %492 : f32 to vector<8x8xf32>
    %494 = arith.addf %491, %493 : vector<8x8xf32>
    %cst_65 = arith.constant 0.000000e+00 : f32
    %495 = vector.broadcast %cst_65 : f32 to vector<8x8xf32>
    %496 = arith.maximumf %494, %495 : vector<8x8xf32>
    %c76 = arith.constant 76 : index
    %497 = memref.load %arg4[%c76] : memref<128xf32, #tpu.memory_space<smem>>
    %498 = vector.broadcast %497 : f32 to vector<8x8xf32>
    %499 = arith.mulf %496, %498 : vector<8x8xf32>
    %500 = arith.addf %476, %499 : vector<8x8xf32>
    %c77 = arith.constant 77 : index
    %501 = memref.load %arg4[%c77] : memref<128xf32, #tpu.memory_space<smem>>
    %502 = vector.broadcast %501 : f32 to vector<8x8xf32>
    %503 = arith.mulf %496, %502 : vector<8x8xf32>
    %504 = arith.addf %480, %503 : vector<8x8xf32>
    %c78 = arith.constant 78 : index
    %505 = memref.load %arg4[%c78] : memref<128xf32, #tpu.memory_space<smem>>
    %506 = vector.broadcast %505 : f32 to vector<8x8xf32>
    %507 = arith.mulf %496, %506 : vector<8x8xf32>
    %508 = arith.addf %484, %507 : vector<8x8xf32>
    %c79 = arith.constant 79 : index
    %509 = memref.load %arg4[%c79] : memref<128xf32, #tpu.memory_space<smem>>
    %510 = vector.broadcast %509 : f32 to vector<8x8xf32>
    %511 = arith.mulf %496, %510 : vector<8x8xf32>
    %512 = arith.addf %488, %511 : vector<8x8xf32>
    %c20_66 = arith.constant 20 : index
    %513 = memref.load %arg2[%c20_66] : memref<32xf32, #tpu.memory_space<smem>>
    %514 = vector.broadcast %513 : f32 to vector<8x8xf32>
    %515 = arith.mulf %36, %514 : vector<8x8xf32>
    %c20_67 = arith.constant 20 : index
    %516 = memref.load %arg3[%c20_67] : memref<32xf32, #tpu.memory_space<smem>>
    %517 = vector.broadcast %516 : f32 to vector<8x8xf32>
    %518 = arith.addf %515, %517 : vector<8x8xf32>
    %cst_68 = arith.constant 0.000000e+00 : f32
    %519 = vector.broadcast %cst_68 : f32 to vector<8x8xf32>
    %520 = arith.maximumf %518, %519 : vector<8x8xf32>
    %c80 = arith.constant 80 : index
    %521 = memref.load %arg4[%c80] : memref<128xf32, #tpu.memory_space<smem>>
    %522 = vector.broadcast %521 : f32 to vector<8x8xf32>
    %523 = arith.mulf %520, %522 : vector<8x8xf32>
    %524 = arith.addf %500, %523 : vector<8x8xf32>
    %c81 = arith.constant 81 : index
    %525 = memref.load %arg4[%c81] : memref<128xf32, #tpu.memory_space<smem>>
    %526 = vector.broadcast %525 : f32 to vector<8x8xf32>
    %527 = arith.mulf %520, %526 : vector<8x8xf32>
    %528 = arith.addf %504, %527 : vector<8x8xf32>
    %c82 = arith.constant 82 : index
    %529 = memref.load %arg4[%c82] : memref<128xf32, #tpu.memory_space<smem>>
    %530 = vector.broadcast %529 : f32 to vector<8x8xf32>
    %531 = arith.mulf %520, %530 : vector<8x8xf32>
    %532 = arith.addf %508, %531 : vector<8x8xf32>
    %c83 = arith.constant 83 : index
    %533 = memref.load %arg4[%c83] : memref<128xf32, #tpu.memory_space<smem>>
    %534 = vector.broadcast %533 : f32 to vector<8x8xf32>
    %535 = arith.mulf %520, %534 : vector<8x8xf32>
    %536 = arith.addf %512, %535 : vector<8x8xf32>
    %c21_69 = arith.constant 21 : index
    %537 = memref.load %arg2[%c21_69] : memref<32xf32, #tpu.memory_space<smem>>
    %538 = vector.broadcast %537 : f32 to vector<8x8xf32>
    %539 = arith.mulf %36, %538 : vector<8x8xf32>
    %c21_70 = arith.constant 21 : index
    %540 = memref.load %arg3[%c21_70] : memref<32xf32, #tpu.memory_space<smem>>
    %541 = vector.broadcast %540 : f32 to vector<8x8xf32>
    %542 = arith.addf %539, %541 : vector<8x8xf32>
    %cst_71 = arith.constant 0.000000e+00 : f32
    %543 = vector.broadcast %cst_71 : f32 to vector<8x8xf32>
    %544 = arith.maximumf %542, %543 : vector<8x8xf32>
    %c84 = arith.constant 84 : index
    %545 = memref.load %arg4[%c84] : memref<128xf32, #tpu.memory_space<smem>>
    %546 = vector.broadcast %545 : f32 to vector<8x8xf32>
    %547 = arith.mulf %544, %546 : vector<8x8xf32>
    %548 = arith.addf %524, %547 : vector<8x8xf32>
    %c85 = arith.constant 85 : index
    %549 = memref.load %arg4[%c85] : memref<128xf32, #tpu.memory_space<smem>>
    %550 = vector.broadcast %549 : f32 to vector<8x8xf32>
    %551 = arith.mulf %544, %550 : vector<8x8xf32>
    %552 = arith.addf %528, %551 : vector<8x8xf32>
    %c86 = arith.constant 86 : index
    %553 = memref.load %arg4[%c86] : memref<128xf32, #tpu.memory_space<smem>>
    %554 = vector.broadcast %553 : f32 to vector<8x8xf32>
    %555 = arith.mulf %544, %554 : vector<8x8xf32>
    %556 = arith.addf %532, %555 : vector<8x8xf32>
    %c87 = arith.constant 87 : index
    %557 = memref.load %arg4[%c87] : memref<128xf32, #tpu.memory_space<smem>>
    %558 = vector.broadcast %557 : f32 to vector<8x8xf32>
    %559 = arith.mulf %544, %558 : vector<8x8xf32>
    %560 = arith.addf %536, %559 : vector<8x8xf32>
    %c22_72 = arith.constant 22 : index
    %561 = memref.load %arg2[%c22_72] : memref<32xf32, #tpu.memory_space<smem>>
    %562 = vector.broadcast %561 : f32 to vector<8x8xf32>
    %563 = arith.mulf %36, %562 : vector<8x8xf32>
    %c22_73 = arith.constant 22 : index
    %564 = memref.load %arg3[%c22_73] : memref<32xf32, #tpu.memory_space<smem>>
    %565 = vector.broadcast %564 : f32 to vector<8x8xf32>
    %566 = arith.addf %563, %565 : vector<8x8xf32>
    %cst_74 = arith.constant 0.000000e+00 : f32
    %567 = vector.broadcast %cst_74 : f32 to vector<8x8xf32>
    %568 = arith.maximumf %566, %567 : vector<8x8xf32>
    %c88 = arith.constant 88 : index
    %569 = memref.load %arg4[%c88] : memref<128xf32, #tpu.memory_space<smem>>
    %570 = vector.broadcast %569 : f32 to vector<8x8xf32>
    %571 = arith.mulf %568, %570 : vector<8x8xf32>
    %572 = arith.addf %548, %571 : vector<8x8xf32>
    %c89 = arith.constant 89 : index
    %573 = memref.load %arg4[%c89] : memref<128xf32, #tpu.memory_space<smem>>
    %574 = vector.broadcast %573 : f32 to vector<8x8xf32>
    %575 = arith.mulf %568, %574 : vector<8x8xf32>
    %576 = arith.addf %552, %575 : vector<8x8xf32>
    %c90 = arith.constant 90 : index
    %577 = memref.load %arg4[%c90] : memref<128xf32, #tpu.memory_space<smem>>
    %578 = vector.broadcast %577 : f32 to vector<8x8xf32>
    %579 = arith.mulf %568, %578 : vector<8x8xf32>
    %580 = arith.addf %556, %579 : vector<8x8xf32>
    %c91 = arith.constant 91 : index
    %581 = memref.load %arg4[%c91] : memref<128xf32, #tpu.memory_space<smem>>
    %582 = vector.broadcast %581 : f32 to vector<8x8xf32>
    %583 = arith.mulf %568, %582 : vector<8x8xf32>
    %584 = arith.addf %560, %583 : vector<8x8xf32>
    %c23_75 = arith.constant 23 : index
    %585 = memref.load %arg2[%c23_75] : memref<32xf32, #tpu.memory_space<smem>>
    %586 = vector.broadcast %585 : f32 to vector<8x8xf32>
    %587 = arith.mulf %36, %586 : vector<8x8xf32>
    %c23_76 = arith.constant 23 : index
    %588 = memref.load %arg3[%c23_76] : memref<32xf32, #tpu.memory_space<smem>>
    %589 = vector.broadcast %588 : f32 to vector<8x8xf32>
    %590 = arith.addf %587, %589 : vector<8x8xf32>
    %cst_77 = arith.constant 0.000000e+00 : f32
    %591 = vector.broadcast %cst_77 : f32 to vector<8x8xf32>
    %592 = arith.maximumf %590, %591 : vector<8x8xf32>
    %c92 = arith.constant 92 : index
    %593 = memref.load %arg4[%c92] : memref<128xf32, #tpu.memory_space<smem>>
    %594 = vector.broadcast %593 : f32 to vector<8x8xf32>
    %595 = arith.mulf %592, %594 : vector<8x8xf32>
    %596 = arith.addf %572, %595 : vector<8x8xf32>
    %c93 = arith.constant 93 : index
    %597 = memref.load %arg4[%c93] : memref<128xf32, #tpu.memory_space<smem>>
    %598 = vector.broadcast %597 : f32 to vector<8x8xf32>
    %599 = arith.mulf %592, %598 : vector<8x8xf32>
    %600 = arith.addf %576, %599 : vector<8x8xf32>
    %c94 = arith.constant 94 : index
    %601 = memref.load %arg4[%c94] : memref<128xf32, #tpu.memory_space<smem>>
    %602 = vector.broadcast %601 : f32 to vector<8x8xf32>
    %603 = arith.mulf %592, %602 : vector<8x8xf32>
    %604 = arith.addf %580, %603 : vector<8x8xf32>
    %c95 = arith.constant 95 : index
    %605 = memref.load %arg4[%c95] : memref<128xf32, #tpu.memory_space<smem>>
    %606 = vector.broadcast %605 : f32 to vector<8x8xf32>
    %607 = arith.mulf %592, %606 : vector<8x8xf32>
    %608 = arith.addf %584, %607 : vector<8x8xf32>
    %c24_78 = arith.constant 24 : index
    %609 = memref.load %arg2[%c24_78] : memref<32xf32, #tpu.memory_space<smem>>
    %610 = vector.broadcast %609 : f32 to vector<8x8xf32>
    %611 = arith.mulf %36, %610 : vector<8x8xf32>
    %c24_79 = arith.constant 24 : index
    %612 = memref.load %arg3[%c24_79] : memref<32xf32, #tpu.memory_space<smem>>
    %613 = vector.broadcast %612 : f32 to vector<8x8xf32>
    %614 = arith.addf %611, %613 : vector<8x8xf32>
    %cst_80 = arith.constant 0.000000e+00 : f32
    %615 = vector.broadcast %cst_80 : f32 to vector<8x8xf32>
    %616 = arith.maximumf %614, %615 : vector<8x8xf32>
    %c96 = arith.constant 96 : index
    %617 = memref.load %arg4[%c96] : memref<128xf32, #tpu.memory_space<smem>>
    %618 = vector.broadcast %617 : f32 to vector<8x8xf32>
    %619 = arith.mulf %616, %618 : vector<8x8xf32>
    %620 = arith.addf %596, %619 : vector<8x8xf32>
    %c97 = arith.constant 97 : index
    %621 = memref.load %arg4[%c97] : memref<128xf32, #tpu.memory_space<smem>>
    %622 = vector.broadcast %621 : f32 to vector<8x8xf32>
    %623 = arith.mulf %616, %622 : vector<8x8xf32>
    %624 = arith.addf %600, %623 : vector<8x8xf32>
    %c98 = arith.constant 98 : index
    %625 = memref.load %arg4[%c98] : memref<128xf32, #tpu.memory_space<smem>>
    %626 = vector.broadcast %625 : f32 to vector<8x8xf32>
    %627 = arith.mulf %616, %626 : vector<8x8xf32>
    %628 = arith.addf %604, %627 : vector<8x8xf32>
    %c99 = arith.constant 99 : index
    %629 = memref.load %arg4[%c99] : memref<128xf32, #tpu.memory_space<smem>>
    %630 = vector.broadcast %629 : f32 to vector<8x8xf32>
    %631 = arith.mulf %616, %630 : vector<8x8xf32>
    %632 = arith.addf %608, %631 : vector<8x8xf32>
    %c25_81 = arith.constant 25 : index
    %633 = memref.load %arg2[%c25_81] : memref<32xf32, #tpu.memory_space<smem>>
    %634 = vector.broadcast %633 : f32 to vector<8x8xf32>
    %635 = arith.mulf %36, %634 : vector<8x8xf32>
    %c25_82 = arith.constant 25 : index
    %636 = memref.load %arg3[%c25_82] : memref<32xf32, #tpu.memory_space<smem>>
    %637 = vector.broadcast %636 : f32 to vector<8x8xf32>
    %638 = arith.addf %635, %637 : vector<8x8xf32>
    %cst_83 = arith.constant 0.000000e+00 : f32
    %639 = vector.broadcast %cst_83 : f32 to vector<8x8xf32>
    %640 = arith.maximumf %638, %639 : vector<8x8xf32>
    %c100 = arith.constant 100 : index
    %641 = memref.load %arg4[%c100] : memref<128xf32, #tpu.memory_space<smem>>
    %642 = vector.broadcast %641 : f32 to vector<8x8xf32>
    %643 = arith.mulf %640, %642 : vector<8x8xf32>
    %644 = arith.addf %620, %643 : vector<8x8xf32>
    %c101 = arith.constant 101 : index
    %645 = memref.load %arg4[%c101] : memref<128xf32, #tpu.memory_space<smem>>
    %646 = vector.broadcast %645 : f32 to vector<8x8xf32>
    %647 = arith.mulf %640, %646 : vector<8x8xf32>
    %648 = arith.addf %624, %647 : vector<8x8xf32>
    %c102 = arith.constant 102 : index
    %649 = memref.load %arg4[%c102] : memref<128xf32, #tpu.memory_space<smem>>
    %650 = vector.broadcast %649 : f32 to vector<8x8xf32>
    %651 = arith.mulf %640, %650 : vector<8x8xf32>
    %652 = arith.addf %628, %651 : vector<8x8xf32>
    %c103 = arith.constant 103 : index
    %653 = memref.load %arg4[%c103] : memref<128xf32, #tpu.memory_space<smem>>
    %654 = vector.broadcast %653 : f32 to vector<8x8xf32>
    %655 = arith.mulf %640, %654 : vector<8x8xf32>
    %656 = arith.addf %632, %655 : vector<8x8xf32>
    %c26_84 = arith.constant 26 : index
    %657 = memref.load %arg2[%c26_84] : memref<32xf32, #tpu.memory_space<smem>>
    %658 = vector.broadcast %657 : f32 to vector<8x8xf32>
    %659 = arith.mulf %36, %658 : vector<8x8xf32>
    %c26_85 = arith.constant 26 : index
    %660 = memref.load %arg3[%c26_85] : memref<32xf32, #tpu.memory_space<smem>>
    %661 = vector.broadcast %660 : f32 to vector<8x8xf32>
    %662 = arith.addf %659, %661 : vector<8x8xf32>
    %cst_86 = arith.constant 0.000000e+00 : f32
    %663 = vector.broadcast %cst_86 : f32 to vector<8x8xf32>
    %664 = arith.maximumf %662, %663 : vector<8x8xf32>
    %c104 = arith.constant 104 : index
    %665 = memref.load %arg4[%c104] : memref<128xf32, #tpu.memory_space<smem>>
    %666 = vector.broadcast %665 : f32 to vector<8x8xf32>
    %667 = arith.mulf %664, %666 : vector<8x8xf32>
    %668 = arith.addf %644, %667 : vector<8x8xf32>
    %c105 = arith.constant 105 : index
    %669 = memref.load %arg4[%c105] : memref<128xf32, #tpu.memory_space<smem>>
    %670 = vector.broadcast %669 : f32 to vector<8x8xf32>
    %671 = arith.mulf %664, %670 : vector<8x8xf32>
    %672 = arith.addf %648, %671 : vector<8x8xf32>
    %c106 = arith.constant 106 : index
    %673 = memref.load %arg4[%c106] : memref<128xf32, #tpu.memory_space<smem>>
    %674 = vector.broadcast %673 : f32 to vector<8x8xf32>
    %675 = arith.mulf %664, %674 : vector<8x8xf32>
    %676 = arith.addf %652, %675 : vector<8x8xf32>
    %c107 = arith.constant 107 : index
    %677 = memref.load %arg4[%c107] : memref<128xf32, #tpu.memory_space<smem>>
    %678 = vector.broadcast %677 : f32 to vector<8x8xf32>
    %679 = arith.mulf %664, %678 : vector<8x8xf32>
    %680 = arith.addf %656, %679 : vector<8x8xf32>
    %c27_87 = arith.constant 27 : index
    %681 = memref.load %arg2[%c27_87] : memref<32xf32, #tpu.memory_space<smem>>
    %682 = vector.broadcast %681 : f32 to vector<8x8xf32>
    %683 = arith.mulf %36, %682 : vector<8x8xf32>
    %c27_88 = arith.constant 27 : index
    %684 = memref.load %arg3[%c27_88] : memref<32xf32, #tpu.memory_space<smem>>
    %685 = vector.broadcast %684 : f32 to vector<8x8xf32>
    %686 = arith.addf %683, %685 : vector<8x8xf32>
    %cst_89 = arith.constant 0.000000e+00 : f32
    %687 = vector.broadcast %cst_89 : f32 to vector<8x8xf32>
    %688 = arith.maximumf %686, %687 : vector<8x8xf32>
    %c108 = arith.constant 108 : index
    %689 = memref.load %arg4[%c108] : memref<128xf32, #tpu.memory_space<smem>>
    %690 = vector.broadcast %689 : f32 to vector<8x8xf32>
    %691 = arith.mulf %688, %690 : vector<8x8xf32>
    %692 = arith.addf %668, %691 : vector<8x8xf32>
    %c109 = arith.constant 109 : index
    %693 = memref.load %arg4[%c109] : memref<128xf32, #tpu.memory_space<smem>>
    %694 = vector.broadcast %693 : f32 to vector<8x8xf32>
    %695 = arith.mulf %688, %694 : vector<8x8xf32>
    %696 = arith.addf %672, %695 : vector<8x8xf32>
    %c110 = arith.constant 110 : index
    %697 = memref.load %arg4[%c110] : memref<128xf32, #tpu.memory_space<smem>>
    %698 = vector.broadcast %697 : f32 to vector<8x8xf32>
    %699 = arith.mulf %688, %698 : vector<8x8xf32>
    %700 = arith.addf %676, %699 : vector<8x8xf32>
    %c111 = arith.constant 111 : index
    %701 = memref.load %arg4[%c111] : memref<128xf32, #tpu.memory_space<smem>>
    %702 = vector.broadcast %701 : f32 to vector<8x8xf32>
    %703 = arith.mulf %688, %702 : vector<8x8xf32>
    %704 = arith.addf %680, %703 : vector<8x8xf32>
    %c28_90 = arith.constant 28 : index
    %705 = memref.load %arg2[%c28_90] : memref<32xf32, #tpu.memory_space<smem>>
    %706 = vector.broadcast %705 : f32 to vector<8x8xf32>
    %707 = arith.mulf %36, %706 : vector<8x8xf32>
    %c28_91 = arith.constant 28 : index
    %708 = memref.load %arg3[%c28_91] : memref<32xf32, #tpu.memory_space<smem>>
    %709 = vector.broadcast %708 : f32 to vector<8x8xf32>
    %710 = arith.addf %707, %709 : vector<8x8xf32>
    %cst_92 = arith.constant 0.000000e+00 : f32
    %711 = vector.broadcast %cst_92 : f32 to vector<8x8xf32>
    %712 = arith.maximumf %710, %711 : vector<8x8xf32>
    %c112 = arith.constant 112 : index
    %713 = memref.load %arg4[%c112] : memref<128xf32, #tpu.memory_space<smem>>
    %714 = vector.broadcast %713 : f32 to vector<8x8xf32>
    %715 = arith.mulf %712, %714 : vector<8x8xf32>
    %716 = arith.addf %692, %715 : vector<8x8xf32>
    %c113 = arith.constant 113 : index
    %717 = memref.load %arg4[%c113] : memref<128xf32, #tpu.memory_space<smem>>
    %718 = vector.broadcast %717 : f32 to vector<8x8xf32>
    %719 = arith.mulf %712, %718 : vector<8x8xf32>
    %720 = arith.addf %696, %719 : vector<8x8xf32>
    %c114 = arith.constant 114 : index
    %721 = memref.load %arg4[%c114] : memref<128xf32, #tpu.memory_space<smem>>
    %722 = vector.broadcast %721 : f32 to vector<8x8xf32>
    %723 = arith.mulf %712, %722 : vector<8x8xf32>
    %724 = arith.addf %700, %723 : vector<8x8xf32>
    %c115 = arith.constant 115 : index
    %725 = memref.load %arg4[%c115] : memref<128xf32, #tpu.memory_space<smem>>
    %726 = vector.broadcast %725 : f32 to vector<8x8xf32>
    %727 = arith.mulf %712, %726 : vector<8x8xf32>
    %728 = arith.addf %704, %727 : vector<8x8xf32>
    %c29_93 = arith.constant 29 : index
    %729 = memref.load %arg2[%c29_93] : memref<32xf32, #tpu.memory_space<smem>>
    %730 = vector.broadcast %729 : f32 to vector<8x8xf32>
    %731 = arith.mulf %36, %730 : vector<8x8xf32>
    %c29_94 = arith.constant 29 : index
    %732 = memref.load %arg3[%c29_94] : memref<32xf32, #tpu.memory_space<smem>>
    %733 = vector.broadcast %732 : f32 to vector<8x8xf32>
    %734 = arith.addf %731, %733 : vector<8x8xf32>
    %cst_95 = arith.constant 0.000000e+00 : f32
    %735 = vector.broadcast %cst_95 : f32 to vector<8x8xf32>
    %736 = arith.maximumf %734, %735 : vector<8x8xf32>
    %c116 = arith.constant 116 : index
    %737 = memref.load %arg4[%c116] : memref<128xf32, #tpu.memory_space<smem>>
    %738 = vector.broadcast %737 : f32 to vector<8x8xf32>
    %739 = arith.mulf %736, %738 : vector<8x8xf32>
    %740 = arith.addf %716, %739 : vector<8x8xf32>
    %c117 = arith.constant 117 : index
    %741 = memref.load %arg4[%c117] : memref<128xf32, #tpu.memory_space<smem>>
    %742 = vector.broadcast %741 : f32 to vector<8x8xf32>
    %743 = arith.mulf %736, %742 : vector<8x8xf32>
    %744 = arith.addf %720, %743 : vector<8x8xf32>
    %c118 = arith.constant 118 : index
    %745 = memref.load %arg4[%c118] : memref<128xf32, #tpu.memory_space<smem>>
    %746 = vector.broadcast %745 : f32 to vector<8x8xf32>
    %747 = arith.mulf %736, %746 : vector<8x8xf32>
    %748 = arith.addf %724, %747 : vector<8x8xf32>
    %c119 = arith.constant 119 : index
    %749 = memref.load %arg4[%c119] : memref<128xf32, #tpu.memory_space<smem>>
    %750 = vector.broadcast %749 : f32 to vector<8x8xf32>
    %751 = arith.mulf %736, %750 : vector<8x8xf32>
    %752 = arith.addf %728, %751 : vector<8x8xf32>
    %c30_96 = arith.constant 30 : index
    %753 = memref.load %arg2[%c30_96] : memref<32xf32, #tpu.memory_space<smem>>
    %754 = vector.broadcast %753 : f32 to vector<8x8xf32>
    %755 = arith.mulf %36, %754 : vector<8x8xf32>
    %c30_97 = arith.constant 30 : index
    %756 = memref.load %arg3[%c30_97] : memref<32xf32, #tpu.memory_space<smem>>
    %757 = vector.broadcast %756 : f32 to vector<8x8xf32>
    %758 = arith.addf %755, %757 : vector<8x8xf32>
    %cst_98 = arith.constant 0.000000e+00 : f32
    %759 = vector.broadcast %cst_98 : f32 to vector<8x8xf32>
    %760 = arith.maximumf %758, %759 : vector<8x8xf32>
    %c120 = arith.constant 120 : index
    %761 = memref.load %arg4[%c120] : memref<128xf32, #tpu.memory_space<smem>>
    %762 = vector.broadcast %761 : f32 to vector<8x8xf32>
    %763 = arith.mulf %760, %762 : vector<8x8xf32>
    %764 = arith.addf %740, %763 : vector<8x8xf32>
    %c121 = arith.constant 121 : index
    %765 = memref.load %arg4[%c121] : memref<128xf32, #tpu.memory_space<smem>>
    %766 = vector.broadcast %765 : f32 to vector<8x8xf32>
    %767 = arith.mulf %760, %766 : vector<8x8xf32>
    %768 = arith.addf %744, %767 : vector<8x8xf32>
    %c122 = arith.constant 122 : index
    %769 = memref.load %arg4[%c122] : memref<128xf32, #tpu.memory_space<smem>>
    %770 = vector.broadcast %769 : f32 to vector<8x8xf32>
    %771 = arith.mulf %760, %770 : vector<8x8xf32>
    %772 = arith.addf %748, %771 : vector<8x8xf32>
    %c123 = arith.constant 123 : index
    %773 = memref.load %arg4[%c123] : memref<128xf32, #tpu.memory_space<smem>>
    %774 = vector.broadcast %773 : f32 to vector<8x8xf32>
    %775 = arith.mulf %760, %774 : vector<8x8xf32>
    %776 = arith.addf %752, %775 : vector<8x8xf32>
    %c31_99 = arith.constant 31 : index
    %777 = memref.load %arg2[%c31_99] : memref<32xf32, #tpu.memory_space<smem>>
    %778 = vector.broadcast %777 : f32 to vector<8x8xf32>
    %779 = arith.mulf %36, %778 : vector<8x8xf32>
    %c31_100 = arith.constant 31 : index
    %780 = memref.load %arg3[%c31_100] : memref<32xf32, #tpu.memory_space<smem>>
    %781 = vector.broadcast %780 : f32 to vector<8x8xf32>
    %782 = arith.addf %779, %781 : vector<8x8xf32>
    %cst_101 = arith.constant 0.000000e+00 : f32
    %783 = vector.broadcast %cst_101 : f32 to vector<8x8xf32>
    %784 = arith.maximumf %782, %783 : vector<8x8xf32>
    %c124 = arith.constant 124 : index
    %785 = memref.load %arg4[%c124] : memref<128xf32, #tpu.memory_space<smem>>
    %786 = vector.broadcast %785 : f32 to vector<8x8xf32>
    %787 = arith.mulf %784, %786 : vector<8x8xf32>
    %788 = arith.addf %764, %787 : vector<8x8xf32>
    %c125 = arith.constant 125 : index
    %789 = memref.load %arg4[%c125] : memref<128xf32, #tpu.memory_space<smem>>
    %790 = vector.broadcast %789 : f32 to vector<8x8xf32>
    %791 = arith.mulf %784, %790 : vector<8x8xf32>
    %792 = arith.addf %768, %791 : vector<8x8xf32>
    %c126 = arith.constant 126 : index
    %793 = memref.load %arg4[%c126] : memref<128xf32, #tpu.memory_space<smem>>
    %794 = vector.broadcast %793 : f32 to vector<8x8xf32>
    %795 = arith.mulf %784, %794 : vector<8x8xf32>
    %796 = arith.addf %772, %795 : vector<8x8xf32>
    %c127 = arith.constant 127 : index
    %797 = memref.load %arg4[%c127] : memref<128xf32, #tpu.memory_space<smem>>
    %798 = vector.broadcast %797 : f32 to vector<8x8xf32>
    %799 = arith.mulf %784, %798 : vector<8x8xf32>
    %800 = arith.addf %776, %799 : vector<8x8xf32>
    %c0_102 = arith.constant 0 : index
    %801 = memref.load %arg5[%c0_102] : memref<4xf32, #tpu.memory_space<smem>>
    %802 = vector.broadcast %801 : f32 to vector<8x8xf32>
    %803 = arith.addf %788, %802 : vector<8x8xf32>
    %c0_103 = arith.constant 0 : index
    %c0_104 = arith.constant 0 : index
    %c0_105 = arith.constant 0 : index
    %804 = vector.load %arg6[%c0_103, %c0_104, %c0_105] : memref<4x8x8xf32, #tpu.memory_space<vmem>>, vector<1x8x8xf32>
    %805 = vector.shape_cast %804 : vector<1x8x8xf32> to vector<8x8xf32>
    %806 = vector.shape_cast %803 : vector<8x8xf32> to vector<1x8x8xf32>
    tpu.vector_store %arg6[%c0_103, %c0_104, %c0_105], %806 {strides = array<i32>} : memref<4x8x8xf32, #tpu.memory_space<vmem>>, vector<1x8x8xf32>,
    %c1_106 = arith.constant 1 : index
    %807 = memref.load %arg5[%c1_106] : memref<4xf32, #tpu.memory_space<smem>>
    %808 = vector.broadcast %807 : f32 to vector<8x8xf32>
    %809 = arith.addf %792, %808 : vector<8x8xf32>
    %c1_107 = arith.constant 1 : index
    %c0_108 = arith.constant 0 : index
    %c0_109 = arith.constant 0 : index
    %810 = vector.load %arg6[%c1_107, %c0_108, %c0_109] : memref<4x8x8xf32, #tpu.memory_space<vmem>>, vector<1x8x8xf32>
    %811 = vector.shape_cast %810 : vector<1x8x8xf32> to vector<8x8xf32>
    %812 = vector.shape_cast %809 : vector<8x8xf32> to vector<1x8x8xf32>
    tpu.vector_store %arg6[%c1_107, %c0_108, %c0_109], %812 {strides = array<i32>} : memref<4x8x8xf32, #tpu.memory_space<vmem>>, vector<1x8x8xf32>,
    %c2_110 = arith.constant 2 : index
    %813 = memref.load %arg5[%c2_110] : memref<4xf32, #tpu.memory_space<smem>>
    %814 = vector.broadcast %813 : f32 to vector<8x8xf32>
    %815 = arith.addf %796, %814 : vector<8x8xf32>
    %c2_111 = arith.constant 2 : index
    %c0_112 = arith.constant 0 : index
    %c0_113 = arith.constant 0 : index
    %816 = vector.load %arg6[%c2_111, %c0_112, %c0_113] : memref<4x8x8xf32, #tpu.memory_space<vmem>>, vector<1x8x8xf32>
    %817 = vector.shape_cast %816 : vector<1x8x8xf32> to vector<8x8xf32>
    %818 = vector.shape_cast %815 : vector<8x8xf32> to vector<1x8x8xf32>
    tpu.vector_store %arg6[%c2_111, %c0_112, %c0_113], %818 {strides = array<i32>} : memref<4x8x8xf32, #tpu.memory_space<vmem>>, vector<1x8x8xf32>,
    %c3_114 = arith.constant 3 : index
    %819 = memref.load %arg5[%c3_114] : memref<4xf32, #tpu.memory_space<smem>>
    %820 = vector.broadcast %819 : f32 to vector<8x8xf32>
    %821 = arith.addf %800, %820 : vector<8x8xf32>
    %c3_115 = arith.constant 3 : index
    %c0_116 = arith.constant 0 : index
    %c0_117 = arith.constant 0 : index
    %822 = vector.load %arg6[%c3_115, %c0_116, %c0_117] : memref<4x8x8xf32, #tpu.memory_space<vmem>>, vector<1x8x8xf32>
    %823 = vector.shape_cast %822 : vector<1x8x8xf32> to vector<8x8xf32>
    %824 = vector.shape_cast %821 : vector<8x8xf32> to vector<1x8x8xf32>
    tpu.vector_store %arg6[%c3_115, %c0_116, %c0_117], %824 {strides = array<i32>} : memref<4x8x8xf32, #tpu.memory_space<vmem>>, vector<1x8x8xf32>,
    return
  }
  func.func @transform_0(%arg0: i32) -> i32 {
    %c0_i32 = arith.constant 0 : i32
    %c0_i32_0 = arith.constant 0 : i32
    return %c0_i32 : i32
  }
  func.func @transform_1(%arg0: i32) -> i32 {
    %c0_i32 = arith.constant 0 : i32
    %c0_i32_0 = arith.constant 0 : i32
    return %c0_i32 : i32
  }
  func.func @transform_2(%arg0: i32) -> i32 {
    %c0_i32 = arith.constant 0 : i32
    %c0_i32_0 = arith.constant 0 : i32
    return %c0_i32 : i32
  }
  func.func @transform_3(%arg0: i32) -> i32 {
    %c0_i32 = arith.constant 0 : i32
    %c0_i32_0 = arith.constant 0 : i32
    return %c0_i32 : i32
  }
  func.func @transform_4(%arg0: i32) -> i32 {
    %c0_i32 = arith.constant 0 : i32
    %c0_i32_0 = arith.constant 0 : i32
    return %c0_i32 : i32
  }
  func.func @transform_5(%arg0: i32) -> (i32, i32, i32) {
    %c0_i32 = arith.constant 0 : i32
    %c0_i32_0 = arith.constant 0 : i32
    %c0_i32_1 = arith.constant 0 : i32
    return %c0_i32, %arg0, %c0_i32_0 : i32, i32, i32
  }
}

</mosaic_0001>

<bundles_post_ra>
// kernel: tpu_custom_call.1
= control target key start
LH: loop header
LB: loop body
LE: loop exit
PB: predicated region body
PF: predicated region fallthrough
CT: control target
= control target key end

     0   :  { %s1837_s0 = inlined_call_operand.hbm [shape: f32[3], index: 0, kind: input, shape index: {}]   ;;  %s1838_s1 = inlined_call_operand.vmem [shape: f32[32], index: 1, kind: input, shape index: {}]   ;;  %s1839_s2 = inlined_call_operand.vmem [shape: f32[32], index: 2, kind: input, shape index: {}]   ;;  %s1840_s3 = inlined_call_operand.vmem [shape: f32[128], index: 3, kind: input, shape index: {}]   ;;  %s1841_s4 = inlined_call_operand.vmem [shape: f32[4], index: 4, kind: input, shape index: {}]   ;;  %s1842_s5 = inlined_call_operand.hbm [shape: f32[4,8,8], index: 5, kind: output, shape index: {}]  }
   0x1   :  { %1843 = sst [smem:[#allocation39_spill]] %s1842_s5 }
   0x2   :  { %10 = vsyncpa [#allocation4], 0 }
   0x3   :  { %11 = vsyncpa [#allocation5], 0 }
   0x4   :  { %12 = vsyncpa [#allocation8], 0 }
   0x5   :  { %13 = vsyncpa [#allocation11], 0  ;;  %s39_s20 = sshll.u32 %s1839_s2, 4  ;;  %s40_s20 = int_to_ptr.vmem [resolvable:$true] %s39_s20 }
   0x6   :  { %14 = vsyncpa [#allocation3], 0  ;;  %s1091_s21 = scalar_lea.vmem %s40_s20, 16  ;;  %p1096_p1 = scmp.lt.s32.totalorder %s40_s20, %s40_s20 }
   0x7   :  { %p1092_p0 = scmp.ne.s32.totalorder %s40_s20, %s1091_s21  ;;  %p1097_p2 = scmp.lt.s32.totalorder %s1091_s21, %s1091_s21 }
   0x9   :  { %p1098_p3 = por %p1097_p2, %p1096_p1 }
   0xb   :  { %p1099_p4 = pnand %p1098_p3, %p1092_p0 }
   0xd   :  { %1102 = shalt.err (!%p1099_p4)
}
   0xe   :  { %s1177_s22 = smov [#allocation7]   ;;  %s1178_s23 = smov [#allocation2]  }
   0xf   :  { %42 = dma.vmem_to_smem %s40_s20, 16, %s1177_s22, [#allocation8]  }
  0x10   :  { %22 = dma.hbm_to_smem %s1837_s0, 16, %s1178_s23, [#allocation4]  }
  0x11   :  { %s29_s2 = sshll.u32 %s1838_s1, 4  ;;  %s49_s30 = sshll.u32 %s1840_s3, 4  ;;  %s30_s2 = int_to_ptr.vmem [resolvable:$true] %s29_s2  ;;  %s50_s30 = int_to_ptr.vmem [resolvable:$true] %s49_s30 }
  0x12   :  { %s1111_s6 = scalar_lea.vmem %s30_s2, 16  ;;  %p1116_p6 = scmp.lt.s32.totalorder %s30_s2, %s30_s2 }
  0x13   :  { %p1112_p5 = scmp.ne.s32.totalorder %s30_s2, %s1111_s6  ;;  %p1117_p7 = scmp.lt.s32.totalorder %s1111_s6, %s1111_s6 }
  0x15   :  { %p1118_p8 = por %p1117_p7, %p1116_p6 }
  0x17   :  { %p1119_p9 = pnand %p1118_p8, %p1112_p5 }
  0x19   :  { %1122 = shalt.err (!%p1119_p9)
}
  0x1a   :  { %s1179_s7 = smov [#allocation6]   ;;  %s1123_s0 = scalar_lea.vmem %s50_s30, 16 }
  0x1b   :  { %32 = dma.vmem_to_smem %s30_s2, 16, %s1179_s7, [#allocation5]  }
  0x1c   :  { %p1124_p10 = scmp.ne.s32.totalorder %s50_s30, %s1123_s0  ;;  %p1128_p11 = scmp.lt.s32.totalorder %s50_s30, %s50_s30 }
  0x1d   :  { %p1129_p12 = scmp.lt.s32.totalorder %s1123_s0, %s1123_s0 }
  0x1f   :  { %p1130_p13 = por %p1129_p12, %p1128_p11 }
  0x21   :  { %p1131_p0 = pnand %p1130_p13, %p1124_p10 }
  0x23   :  { %1134 = shalt.err (!%p1131_p0)
}
  0x24   :  { %s1180_s1 = smov [#allocation9]   ;;  %s59_s9 = sshll.u32 %s1841_s4, 4  ;;  %s60_s9 = int_to_ptr.vmem [resolvable:$true] %s59_s9 }
  0x25   :  { %52 = dma.vmem_to_smem %s50_s30, 16, %s1180_s1, [#allocation8]  }
  0x26   :  { %s1135_s10 = scalar_lea.vmem %s60_s9, 16  ;;  %p1140_p2 = scmp.lt.s32.totalorder %s60_s9, %s60_s9 }
  0x27   :  { %p1136_p1 = scmp.ne.s32.totalorder %s60_s9, %s1135_s10  ;;  %p1141_p3 = scmp.lt.s32.totalorder %s1135_s10, %s1135_s10 }
  0x29   :  { %p1142_p4 = por %p1141_p3, %p1140_p2 }
  0x2b   :  { %p1143_p5 = pnand %p1142_p4, %p1136_p1 }
  0x2d   :  { %1146 = shalt.err (!%p1143_p5)
}
  0x2e   :  { %s1181_s11 = smov [#allocation10]  }
  0x2f   :  { %62 = dma.vmem_to_smem %s60_s9, 16, %s1181_s11, [#allocation11]  }
  0x30   :  { %1167 = dma.done.wait [#allocation4], 16  }
  0x31   :  { %1168 = vsyncadd [#allocation4], 4294967280 }
  0x32   :  { %1169 = dma.done.wait [#allocation5], 16  }
  0x33   :  { %1170 = vsyncadd [#allocation5], 4294967280 }
  0x34   :  { %1171 = dma.done.wait [#allocation8], 32  }
  0x35   :  { %1172 = vsyncadd [#allocation8], 4294967264 }
  0x36   :  { %1173 = dma.done.wait [#allocation11], 16  }
  0x37   :  { %1174 = vsyncadd [#allocation11], 4294967280 }
  0x38   :  { %78 = sfence }
  0x39   :  { %v80_v0 = vlaneseq  ;;  %s85_s4 = sld [smem:[#allocation2]]  ;;  %vm846_vm0 = vcmask 64512  }
  0x3a   :  { %s883_s12 = sld [smem:[#allocation2 + $0x1]] }
  0x3b   :  { %s884_s13 = sld [smem:[#allocation2 + $0x2]]  ;;  %v81_v1 = vshrl.u32 %v80_v0, 7  ;;  %v102_v2 = vand.u32 127, %v80_v0 }
  0x3c   :  { %s1230_s14 = sld [smem:[#allocation6]] }
  0x3d   :  { %s1232_s15 = sld [smem:[#allocation7]]  ;;  %v84_v3 = vcvt.s32.f32 %v81_v1  ;;  %v103_v4 = vcvt.s32.f32 %v102_v2 }
  0x3e   :  { %s1234_s16 = sld [smem:[#allocation9]] }
  0x3f   :  { %s1236_s17 = sld [smem:[#allocation9 + $0x1]]  ;;  %s86_s18 = sand.u32 2147483647, %s85_s4  ;;  %v104_v9 = vsub.f32 %v84_v3, %v103_v4 }
  0x40   :  { %s1238_s19 = sld [smem:[#allocation9 + $0x2]]  ;;  %v93_v6 = vstv %s86_s18 }
  0x41   :  { %s89_s20 = smul.f32 %s884_s13, %s883_s12  ;;  %s1240_s21 = sld [smem:[#allocation9 + $0x3]]  ;;  %v105_v11 = vand.u32 2147483647, %v104_v9 }
  0x42   :  { %s1242_s22 = sld [smem:[#allocation6 + $0x1]]  ;;  %v112_v20 = vstv %s1230_s14 }
  0x43   :  { %s90_s23 = sand.u32 2147483647, %s89_s20  ;;  %s1244_s24 = sld [smem:[#allocation7 + $0x1]]  ;;  %v106_v12 = vmul.f32 %v105_v11, %v93_v6  ;;  %v115_v26 = vstv %s1232_s15 }
  0x44   :  { %v91_v5 = vstv %s90_s23  ;;  %s1246_s25 = sld [smem:[#allocation9 + $0x4]]  ;;  %v119_v33 = vstv %s1234_s16 }
  0x45   :  { %v92_v7 = vmax.f32 %v84_v3, %v91_v5  ;;  %s1248_s26 = sld [smem:[#allocation9 + $0x5]]  ;;  %v107_v13 = vadd.f32 1.0, %v106_v12  ;;  %v122_v34 = vstv %s1236_s17 }
  0x46   :  { %s1250_s27 = sld [smem:[#allocation9 + $0x6]]  ;;  %v125_v35 = vstv %s1238_s19 }
  0x47   :  { %v94_v8 = vmul.f32 %v93_v6, %v92_v7  ;;  %s1252_s2 = sld [smem:[#allocation9 + $0x7]]  ;;  %v128_v36 = vstv %s1240_s21 }
  0x48   :  { %s1254_s28 = sld [smem:[#allocation6 + $0x2]]  ;;  %v131_v21 = vstv %s1242_s22 }
  0x49   :  { %v95_v10 = vadd.f32 1.0, %v94_v8  ;;  %s1256_s29 = sld [smem:[#allocation7 + $0x2]]  ;;  %v134_v27 = vstv %s1244_s24 }
  0x4a   :  { %s1258_s30 = sld [smem:[#allocation9 + $0x8]]  ;;  %v138_v43 = vstv %s1246_s25 }
  0x4b   :  { %1085 = vlog2.f32 %v95_v10  ;;  %s1260_s6 = sld [smem:[#allocation9 + $0x9]]  ;;  %v142_v44 = vstv %s1248_s26 }
  0x4c   :  { %s1262_s7 = sld [smem:[#allocation9 + $0xa]]  ;;  %1087 = vlog2.f32 %v107_v13  ;;  %v146_v45 = vstv %s1250_s27 }
  0x4d   :  { %s1264_s0 = sld [smem:[#allocation9 + $0xb]]  ;;  %v150_v46 = vstv %s1252_s2 }
  0x4e   :  { %s1266_s1 = sld [smem:[#allocation6 + $0x3]]  ;;  %v154_v25 = vstv %s1254_s28 }
  0x4f   :  { %s1268_s3 = sld [smem:[#allocation7 + $0x3]]  ;;  %v157_v31 = vstv %s1256_s29 }
  0x50   :  { %s1270_s8 = sld [smem:[#allocation9 + $0xc]]  ;;  %v161_v47 = vstv %s1258_s30 }
  0x51   :  { %s1272_s9 = sld [smem:[#allocation9 + $0xd]]  ;;  %v165_v48 = vstv %s1260_s6 }
  0x52   :  { %s1274_s10 = sld [smem:[#allocation9 + $0xe]]  ;;  %v169_v49 = vstv %s1262_s7 }
  0x53   :  { %1844 = sst [smem:[#allocation18_spill]] %s1264_s0 }
  0x54   :  { %s1276_s11 = sld [smem:[#allocation9 + $0xf]]  ;;  %v177_v32 = vstv %s1266_s1 }
  0x55   :  { %s1278_s4 = sld [smem:[#allocation6 + $0x4]]  ;;  %v180_v41 = vstv %s1268_s3 }
  0x56   :  { %1845 = sst [smem:[#allocation19_spill]] %s1270_s8 }
  0x57   :  { %1846 = sst [smem:[#allocation20_spill]] %s1272_s9 }
  0x58   :  { %1847 = sst [smem:[#allocation21_spill]] %s1274_s10  ;;  %v1086_v14 = vpop.eup %1085 }
  0x59   :  { %s1280_s12 = sld [smem:[#allocation7 + $0x4]]  ;;  %v97_v15 = vmul.f32 0.6931472, %v1086_v14  ;;  %v1088_v17 = vpop.eup %1087 }
  0x5a   :  { %1848 = sst [smem:[#allocation22_spill]] %s1276_s11  ;;  %v109_v18 = vmul.f32 0.6931472, %v1088_v17 }
  0x5b   :  { %s1282_s13 = sld [smem:[#allocation9 + $0x10]]  ;;  %v98_v16 = vadd.f32 1e-06, %v97_v15  ;;  %v200_v42 = vstv %s1278_s4 }
  0x5c   :  { %s1284_s18 = sld [smem:[#allocation9 + $0x11]] }
  0x5d   :  { %s1286_s20 = sld [smem:[#allocation9 + $0x12]]  ;;  %1089 = vrcp.f32 %v98_v16 }
  0x5e   :  { %s1288_s23 = sld [smem:[#allocation9 + $0x13]] }
  0x5f   :  { %s1290_s5 = sld [smem:[#allocation6 + $0x5]]  ;;  %v203_v50 = vstv %s1280_s12 }
  0x60   :  { %s1292_s10 = sld [smem:[#allocation7 + $0x5]] }
  0x61   :  { %1849 = sst [smem:[#allocation23_spill]] %s1282_s13 }
  0x62   :  { %1850 = sst [smem:[#allocation24_spill]] %s1284_s18 }
  0x63   :  { %1851 = sst [smem:[#allocation25_spill]] %s1286_s20 }
  0x64   :  { %1852 = sst [smem:[#allocation26_spill]] %s1288_s23 }
  0x65   :  { %s1294_s11 = sld [smem:[#allocation9 + $0x14]]  ;;  %v223_v54 = vstv %s1290_s5 }
  0x66   :  { %1853 = sst [smem:[#allocation27_spill]] %s1292_s10 }
  0x67   :  { %s1296_s9 = sld [smem:[#allocation9 + $0x15]] }
  0x68   :  { %s1298_s13 = sld [smem:[#allocation9 + $0x16]] }
  0x69   :  { %s1300_s18 = sld [smem:[#allocation9 + $0x17]] }
  0x6a   :  { %s1302_s20 = sld [smem:[#allocation6 + $0x6]]  ;;  %v1090_v19 = vpop.eup %1089 }
  0x6b   :  { %1854 = sst [smem:[#allocation28_spill]] %s1294_s11  ;;  %v1326_v22 = vmul.f32 %v1090_v19, %v109_v18 }
  0x6c   :  { %s1304_s8 = sld [smem:[#allocation7 + $0x6]] }
  0x6d   :  { %1855 = sst [smem:[#allocation29_spill]] %s1296_s9  ;;  %v113_v23 = vmul.f32 %v112_v20, %v1326_v22  ;;  %v132_v24 = vmul.f32 %v131_v21, %v1326_v22  ;;  %v155_v28 = vmul.f32 %v154_v25, %v1326_v22  ;;  %v178_v38 = vmul.f32 %v177_v32, %v1326_v22 }
  0x6e   :  { %1856 = sst [smem:[#allocation30_spill]] %s1298_s13  ;;  %v201_v53 = vmul.f32 %v200_v42, %v1326_v22  ;;  %v224_v0 = vmul.f32 %v223_v54, %v1326_v22 }
  0x6f   :  { %1857 = sst [smem:[#allocation31_spill]] %s1300_s18  ;;  %v116_v29 = vadd.f32 %v115_v26, %v113_v23  ;;  %v135_v30 = vadd.f32 %v134_v27, %v132_v24  ;;  %v158_v37 = vadd.f32 %v157_v31, %v155_v28  ;;  %v181_v52 = vadd.f32 %v180_v41, %v178_v38 }
  0x70   :  { %s1306_s23 = sld [smem:[#allocation9 + $0x18]]  ;;  %v246_v2 = vstv %s1302_s20  ;;  %v204_v6 = vadd.f32 %v203_v50, %v201_v53 }
  0x71   :  { %s1308_s0 = sld [smem:[#allocation9 + $0x19]]  ;;  %v117_v39 = vmax.f32 %v116_v29, 0.0  ;;  %v136_v40 = vmax.f32 %v135_v30, 0.0  ;;  %v159_v51 = vmax.f32 %v158_v37, 0.0  ;;  %v182_v5 = vmax.f32 %v181_v52, 0.0 }
  0x72   :  { %1858 = sst [smem:[#allocation32_spill]] %s1304_s8  ;;  %v247_v16 = vmul.f32 %v246_v2, %v1326_v22  ;;  %v205_v21 = vmax.f32 %v204_v6, 0.0 }
  0x73   :  { %s1310_s10 = sld [smem:[#allocation9 + $0x1a]]  ;;  %v120_v55 = vmul.f32 %v119_v33, %v117_v39  ;;  %v123_v56 = vmul.f32 %v122_v34, %v117_v39  ;;  %v139_v57 = vmul.f32 %v138_v43, %v136_v40  ;;  %v143_v58 = vmul.f32 %v142_v44, %v136_v40 }
  0x74   :  { %s1312_s11 = sld [smem:[#allocation9 + $0x1b]]  ;;  %v126_v59 = vmul.f32 %v125_v35, %v117_v39  ;;  %v147_v60 = vmul.f32 %v146_v45, %v136_v40  ;;  %v129_v3 = vmul.f32 %v128_v36, %v117_v39  ;;  %v151_v4 = vmul.f32 %v150_v46, %v136_v40 }
  0x75   :  { %s1314_s9 = sld [smem:[#allocation6 + $0x7]]  ;;  %v140_v7 = vadd.f32 %v139_v57, %v120_v55  ;;  %v144_v8 = vadd.f32 %v143_v58, %v123_v56  ;;  %v162_v9 = vmul.f32 %v161_v47, %v159_v51  ;;  %v166_v10 = vmul.f32 %v165_v48, %v159_v51 }
  0x76   :  { %s1316_s18 = sld [smem:[#allocation7 + $0x7]]  ;;  %v148_v11 = vadd.f32 %v147_v60, %v126_v59  ;;  %v170_v12 = vmul.f32 %v169_v49, %v159_v51  ;;  %v152_v19 = vadd.f32 %v151_v4, %v129_v3  ;;  %v253_v49 = vstv %s1306_s23 }
  0x77   :  { %1859 = sst [smem:[#allocation33_spill]] %s1308_s0  ;;  %v163_v24 = vadd.f32 %v162_v9, %v140_v7  ;;  %v167_v25 = vadd.f32 %v166_v10, %v144_v8 }
  0x78   :  { %s1318_s13 = sld [smem:[#allocation9 + $0x1c]]  ;;  %v171_v28 = vadd.f32 %v170_v12, %v148_v11 }
  0x79   :  { %1860 = sst [smem:[#allocation34_spill]] %s1310_s10 }
  0x7a   :  { %1861 = sst [smem:[#allocation35_spill]] %s1312_s11 }
  0x7b   :  { %s1320_s8 = sld [smem:[#allocation9 + $0x1d]]  ;;  %v269_v18 = vstv %s1314_s9 }
  0x7c   :  { %s1324_s0 = sld [smem:[#allocation9 + $0x1e]]  ;;  %v270_v35 = vmul.f32 %v269_v18, %v1326_v22  ;;  %v272_v39 = vstv %s1316_s18 }
  0x7d   :  { %s1328_s11 = sld [smem:[#allocation9 + $0x1f]] }
  0x7e   :  { %s1330_s10 = sld [smem:[#allocation6 + $0x8]]  ;;  %v273_v55 = vadd.f32 %v272_v39, %v270_v35  ;;  %v276_v12 = vstv %s1318_s13 }
  0x7f   :  { %s1339_s14 = sld [smem:[#allocation9 + $0x20]] }
  0x80   :  { %s1341_s22 = sld [smem:[#allocation9 + $0x21]]  ;;  %v274_v10 = vmax.f32 %v273_v55, 0.0 }
  0x81   :  { %1862 = sst [smem:[#allocation36_spill]] %s1320_s8 }
  0x82   :  { %s1335_s8 = sld [smem:[#allocation7 + $0x8]] }
  0x83   :  { %1863 = sst [smem:[#allocation37_spill]] %s1328_s11 }
  0x84   :  { %s1344_s11 = sld [smem:[#allocation9 + $0x22]] }
  0x85   :  { %s1348_s28 = sld [smem:[#allocation9 + $0x23]] }
  0x86   :  { %s1350_s15 = sld [smem:[#allocation6 + $0x9]] }
  0x87   :  { %s1354_s24 = sld [smem:[#allocation7 + $0x9]] }
  0x88   :  { %s1359_s29 = sld [smem:[#allocation9 + $0x24]] }
  0x89   :  { %s1363_s16 = sld [smem:[#allocation9 + $0x25]] }
  0x8a   :  { %s1369_s17 = sld [smem:[#allocation9 + $0x26]]  ;;  %v307_v39 = vstv %s1344_s11 }
  0x8b   :  { %s1865_s19 = sld [smem:[#allocation18_spill]] }
  0x8c   :  { %s1866_s21 = sld [smem:[#allocation19_spill]]  ;;  %v315_v2 = vstv %s1350_s15 }
  0x8d   :  { %s1375_s1 = sld [smem:[#allocation9 + $0x27]] }
  0x8e   :  { %1864 = sst [smem:[#allocation38_spill]] %s1359_s29 }
  0x8f   :  { %s1867_s29 = sld [smem:[#allocation20_spill]] }
  0x90   :  { %s1868_s3 = sld [smem:[#allocation27_spill]]  ;;  %v330_v55 = vstv %s1369_s17 }
  0x91   :  { %s1379_s25 = sld [smem:[#allocation6 + $0xa]]  ;;  %v173_v61 = vstv %s1865_s19 }
  0x92   :  { %s1381_s26 = sld [smem:[#allocation7 + $0xa]]  ;;  %v184_v62 = vstv %s1866_s21  ;;  %v174_v20 = vmul.f32 %v173_v61, %v159_v51  ;;  %v292_v51 = vstv %s1330_s10 }
  0x93   :  { %s1385_s27 = sld [smem:[#allocation9 + $0x28]]  ;;  %v185_v26 = vmul.f32 %v184_v62, %v182_v5 }
  0x94   :  { %s1869_s2 = sld [smem:[#allocation21_spill]]  ;;  %v175_v36 = vadd.f32 %v174_v20, %v152_v19  ;;  %v284_v20 = vstv %s1324_s0 }
  0x95   :  { %v188_v63 = vstv %s1867_s29  ;;  %s1870_s5 = sld [smem:[#allocation22_spill]]  ;;  %v186_v40 = vadd.f32 %v185_v26, %v163_v24  ;;  %v277_v24 = vmul.f32 %v276_v12, %v274_v10 }
  0x96   :  { %v226_v1 = vstv %s1868_s3  ;;  %s1391_s30 = sld [smem:[#allocation9 + $0x29]]  ;;  %v189_v27 = vmul.f32 %v188_v63, %v182_v5  ;;  %v293_v63 = vmul.f32 %v292_v51, %v1326_v22 }
  0x97   :  { %s1871_s6 = sld [smem:[#allocation23_spill]]  ;;  %v227_v23 = vadd.f32 %v226_v1, %v224_v0  ;;  %v295_v1 = vstv %s1335_s8 }
  0x98   :  { %s1872_s7 = sld [smem:[#allocation32_spill]]  ;;  %v190_v41 = vadd.f32 %v189_v27, %v167_v25 }
  0x99   :  { %s1393_s4 = sld [smem:[#allocation9 + $0x2a]]  ;;  %v228_v38 = vmax.f32 %v227_v23, 0.0 }
  0x9a   :  { %s1395_s12 = sld [smem:[#allocation9 + $0x2b]]  ;;  %v192_v13 = vstv %s1869_s2 }
  0x9b   :  { %v196_v14 = vstv %s1870_s5  ;;  %s1399_s20 = sld [smem:[#allocation6 + $0xb]]  ;;  %v193_v29 = vmul.f32 %v192_v13, %v182_v5  ;;  %v296_v13 = vadd.f32 %v295_v1, %v293_v63 }
  0x9c   :  { %s1875_s29 = sld [smem:[#allocation24_spill]]  ;;  %v197_v37 = vmul.f32 %v196_v14, %v182_v5  ;;  %v316_v14 = vmul.f32 %v315_v2, %v1326_v22 }
  0x9d   :  { %v207_v15 = vstv %s1871_s6  ;;  %s1876_s19 = sld [smem:[#allocation25_spill]]  ;;  %v194_v44 = vadd.f32 %v193_v29, %v171_v28  ;;  %v297_v27 = vmax.f32 %v296_v13, 0.0 }
  0x9e   :  { %v249_v17 = vstv %s1872_s7  ;;  %s1405_s21 = sld [smem:[#allocation7 + $0xb]]  ;;  %v208_v42 = vmul.f32 %v207_v15, %v205_v21  ;;  %v198_v52 = vadd.f32 %v197_v37, %v175_v36  ;;  %v318_v15 = vstv %s1354_s24 }
  0x9f   :  { %1873 = sst [smem:[#allocation18_spill]] %s1393_s4  ;;  %v250_v34 = vadd.f32 %v249_v17, %v247_v16  ;;  %v338_v16 = vstv %s1379_s25  ;;  %v319_v28 = vadd.f32 %v318_v15, %v316_v14 }
  0xa0   :  { %1874 = sst [smem:[#allocation19_spill]] %s1395_s12  ;;  %v209_v56 = vadd.f32 %v208_v42, %v186_v40  ;;  %v339_v29 = vmul.f32 %v338_v16, %v1326_v22 }
  0xa1   :  { %s1877_s3 = sld [smem:[#allocation26_spill]]  ;;  %v251_v54 = vmax.f32 %v250_v34, 0.0  ;;  %v361_v36 = vstv %s1399_s20  ;;  %v320_v42 = vmax.f32 %v319_v28, 0.0 }
  0xa2   :  { %s1878_s4 = sld [smem:[#allocation28_spill]]  ;;  %v211_v30 = vstv %s1875_s29 }
  0xa3   :  { %s1407_s12 = sld [smem:[#allocation9 + $0x2c]]  ;;  %v215_v31 = vstv %s1876_s19  ;;  %v212_v43 = vmul.f32 %v211_v30, %v205_v21  ;;  %v254_v5 = vmul.f32 %v253_v49, %v251_v54 }
  0xa4   :  { %s1409_s2 = sld [smem:[#allocation9 + $0x2d]]  ;;  %v216_v45 = vmul.f32 %v215_v31, %v205_v21  ;;  %v285_v31 = vmul.f32 %v284_v20, %v274_v10 }
  0xa5   :  { %s1413_s9 = sld [smem:[#allocation9 + $0x2e]]  ;;  %v213_v57 = vadd.f32 %v212_v43, %v190_v41  ;;  %v311_v41 = vstv %s1348_s28 }
  0xa6   :  { %s1882_s5 = sld [smem:[#allocation29_spill]]  ;;  %v217_v60 = vadd.f32 %v216_v45, %v194_v44 }
  0xa7   :  { %v219_v32 = vstv %s1877_s3  ;;  %s1883_s6 = sld [smem:[#allocation30_spill]] }
  0xa8   :  { %v230_v33 = vstv %s1878_s4  ;;  %s1418_s7 = sld [smem:[#allocation9 + $0x2f]]  ;;  %v220_v53 = vmul.f32 %v219_v32, %v205_v21  ;;  %v299_v32 = vstv %s1339_s14 }
  0xa9   :  { %1879 = sst [smem:[#allocation20_spill]] %s1407_s12  ;;  %v231_v58 = vmul.f32 %v230_v33, %v228_v38  ;;  %v341_v33 = vstv %s1381_s26  ;;  %v300_v40 = vmul.f32 %v299_v32, %v297_v27 }
  0xaa   :  { %1880 = sst [smem:[#allocation27_spill]] %s1409_s2  ;;  %v221_v3 = vadd.f32 %v220_v53, %v198_v52  ;;  %v342_v43 = vadd.f32 %v341_v33, %v339_v29  ;;  %v308_v52 = vmul.f32 %v307_v39, %v297_v27  ;;  %v312_v53 = vmul.f32 %v311_v41, %v297_v27 }
  0xab   :  { %1881 = sst [smem:[#allocation21_spill]] %s1413_s9  ;;  %v232_v7 = vadd.f32 %v231_v58, %v209_v56  ;;  %v334_v58 = vstv %s1375_s1 }
  0xac   :  { %s1885_s12 = sld [smem:[#allocation31_spill]]  ;;  %v234_v46 = vstv %s1882_s5 }
  0xad   :  { %s1886_s2 = sld [smem:[#allocation33_spill]]  ;;  %v238_v47 = vstv %s1883_s6  ;;  %v235_v59 = vmul.f32 %v234_v46, %v228_v38  ;;  %v255_v21 = vadd.f32 %v254_v5, %v232_v7  ;;  %v335_v7 = vmul.f32 %v334_v58, %v320_v42 }
  0xae   :  { %1884 = sst [smem:[#allocation22_spill]] %s1418_s7  ;;  %v239_v61 = vmul.f32 %v238_v47, %v228_v38  ;;  %v362_v47 = vmul.f32 %v361_v36, %v1326_v22 }
  0xaf   :  { %s1421_s29 = sld [smem:[#allocation6 + $0xc]]  ;;  %v236_v8 = vadd.f32 %v235_v59, %v213_v57  ;;  %v278_v37 = vadd.f32 %v277_v24, %v255_v21  ;;  %v343_v59 = vmax.f32 %v342_v43, 0.0 }
  0xb0   :  { %s1423_s4 = sld [smem:[#allocation7 + $0xc]]  ;;  %v240_v11 = vadd.f32 %v239_v61, %v217_v60  ;;  %v345_v60 = vstv %s1385_s27  ;;  %v349_v61 = vstv %s1391_s30 }
  0xb1   :  { %s1427_s19 = sld [smem:[#allocation9 + $0x30]]  ;;  %v301_v56 = vadd.f32 %v300_v40, %v278_v37 }
  0xb2   :  { %v242_v48 = vstv %s1885_s12  ;;  %s1887_s3 = sld [smem:[#allocation34_spill]] }
  0xb3   :  { %v257_v50 = vstv %s1886_s2  ;;  %s1433_s18 = sld [smem:[#allocation9 + $0x31]]  ;;  %v243_v4 = vmul.f32 %v242_v48, %v228_v38  ;;  %v303_v38 = vstv %s1341_s22 }
  0xb4   :  { %s1888_s7 = sld [smem:[#allocation35_spill]]  ;;  %v258_v6 = vmul.f32 %v257_v50, %v251_v54  ;;  %v304_v49 = vmul.f32 %v303_v38, %v297_v27  ;;  %v364_v50 = vstv %s1405_s21 }
  0xb5   :  { %s1435_s9 = sld [smem:[#allocation9 + $0x32]]  ;;  %v244_v17 = vadd.f32 %v243_v4, %v221_v3  ;;  %v384_v51 = vstv %s1421_s29 }
  0xb6   :  { %s1437_s12 = sld [smem:[#allocation9 + $0x33]]  ;;  %v259_v23 = vadd.f32 %v258_v6, %v236_v8  ;;  %v385_v63 = vmul.f32 %v384_v51, %v1326_v22  ;;  %v387_v2 = vstv %s1423_s4  ;;  %v331_v6 = vmul.f32 %v330_v55, %v320_v42 }
  0xb7   :  { %s1441_s10 = sld [smem:[#allocation6 + $0xd]] }
  0xb8   :  { %v261_v62 = vstv %s1887_s3  ;;  %s1446_s23 = sld [smem:[#allocation7 + $0xd]]  ;;  %v388_v14 = vadd.f32 %v387_v2, %v385_v63 }
  0xb9   :  { %s1448_s2 = sld [smem:[#allocation9 + $0x34]]  ;;  %v262_v9 = vmul.f32 %v261_v62, %v251_v54  ;;  %v365_v62 = vadd.f32 %v364_v50, %v362_v47  ;;  %v395_v39 = vstv %s1433_s18 }
  0xba   :  { %v265_v0 = vstv %s1888_s7  ;;  %s1889_s5 = sld [smem:[#allocation36_spill]] }
  0xbb   :  { %s1450_s6 = sld [smem:[#allocation9 + $0x35]]  ;;  %v266_v18 = vmul.f32 %v265_v0, %v251_v54  ;;  %v263_v26 = vadd.f32 %v262_v9, %v240_v11  ;;  %v326_v54 = vstv %s1363_s16  ;;  %v346_v9 = vmul.f32 %v345_v60, %v343_v59 }
  0xbc   :  { %s1890_s8 = sld [smem:[#allocation37_spill]]  ;;  %v327_v1 = vmul.f32 %v326_v54, %v320_v42  ;;  %v366_v12 = vmax.f32 %v365_v62, 0.0  ;;  %v399_v43 = vstv %s1435_s9 }
  0xbd   :  { %s1454_s15 = sld [smem:[#allocation9 + $0x36]]  ;;  %v267_v34 = vadd.f32 %v266_v18, %v244_v17  ;;  %v286_v45 = vadd.f32 %v285_v31, %v263_v26  ;;  %v407_v3 = vstv %s1441_s10  ;;  %v350_v17 = vmul.f32 %v349_v61, %v343_v59 }
  0xbe   :  { %s1458_s7 = sld [smem:[#allocation9 + $0x37]]  ;;  %v408_v15 = vmul.f32 %v407_v3, %v1326_v22  ;;  %v410_v18 = vstv %s1446_s23 }
  0xbf   :  { %s1462_s3 = sld [smem:[#allocation6 + $0xe]]  ;;  %v309_v4 = vadd.f32 %v308_v52, %v286_v45  ;;  %v414_v51 = vstv %s1448_s2 }
  0xc0   :  { %v280_v19 = vstv %s1889_s5  ;;  %s1465_s13 = sld [smem:[#allocation7 + $0xe]]  ;;  %v411_v31 = vadd.f32 %v410_v18, %v408_v15 }
  0xc1   :  { %s1468_s24 = sld [smem:[#allocation9 + $0x38]]  ;;  %v281_v30 = vmul.f32 %v280_v19, %v274_v10  ;;  %v332_v20 = vadd.f32 %v331_v6, %v309_v4  ;;  %v418_v55 = vstv %s1450_s6 }
  0xc2   :  { %v288_v25 = vstv %s1890_s8  ;;  %s1472_s0 = sld [smem:[#allocation9 + $0x39]]  ;;  %v412_v47 = vmax.f32 %v411_v31, 0.0 }
  0xc3   :  { %s1891_s25 = sld [smem:[#allocation38_spill]]  ;;  %v289_v35 = vmul.f32 %v288_v25, %v274_v10  ;;  %v282_v44 = vadd.f32 %v281_v30, %v259_v23  ;;  %v389_v30 = vmax.f32 %v388_v14, 0.0 }
  0xc4   :  { %s1475_s5 = sld [smem:[#allocation9 + $0x3a]]  ;;  %v415_v62 = vmul.f32 %v414_v51, %v412_v47  ;;  %v426_v63 = vstv %s1458_s7  ;;  %v419_v2 = vmul.f32 %v418_v55, %v412_v47 }
  0xc5   :  { %s1479_s8 = sld [smem:[#allocation9 + $0x3b]]  ;;  %v290_v48 = vadd.f32 %v289_v35, %v267_v34  ;;  %v305_v0 = vadd.f32 %v304_v49, %v282_v44  ;;  %v430_v19 = vstv %s1462_s3  ;;  %v391_v35 = vstv %s1427_s19 }
  0xc6   :  { %s1482_s14 = sld [smem:[#allocation6 + $0xf]]  ;;  %v431_v32 = vmul.f32 %v430_v19, %v1326_v22  ;;  %v433_v36 = vstv %s1465_s13  ;;  %v403_v44 = vstv %s1437_s12  ;;  %v396_v50 = vmul.f32 %v395_v39, %v389_v30 }
  0xc7   :  { %s1486_s26 = sld [smem:[#allocation7 + $0xf]]  ;;  %v313_v5 = vadd.f32 %v312_v53, %v290_v48  ;;  %v328_v16 = vadd.f32 %v327_v1, %v305_v0  ;;  %v400_v54 = vmul.f32 %v399_v43, %v389_v30  ;;  %v404_v58 = vmul.f32 %v403_v44, %v389_v30 }
  0xc8   :  { %s1490_s11 = sld [smem:[#allocation9 + $0x3c]]  ;;  %v434_v48 = vadd.f32 %v433_v36, %v431_v32  ;;  %v437_v3 = vstv %s1468_s24 }
  0xc9   :  { %v322_v46 = vstv %s1891_s25  ;;  %s1494_s22 = sld [smem:[#allocation9 + $0x3d]]  ;;  %v336_v21 = vadd.f32 %v335_v7, %v313_v5  ;;  %v351_v33 = vadd.f32 %v350_v17, %v328_v16  ;;  %v441_v7 = vstv %s1472_s0 }
  0xca   :  { %v323_v57 = vmul.f32 %v322_v46, %v320_v42  ;;  %s1497_s28 = sld [smem:[#allocation9 + $0x3e]]  ;;  %v392_v46 = vmul.f32 %v391_v35, %v389_v30  ;;  %v435_v0 = vmax.f32 %v434_v48, 0.0 }
  0xcb   :  { %s1892_s20 = sld [smem:[#allocation18_spill]]  ;;  %v449_v15 = vstv %s1479_s8 }
  0xcc   :  { %s1893_s21 = sld [smem:[#allocation19_spill]]  ;;  %v324_v8 = vadd.f32 %v323_v57, %v301_v56  ;;  %v453_v40 = vstv %s1482_s14  ;;  %v438_v14 = vmul.f32 %v437_v3, %v435_v0  ;;  %v442_v18 = vmul.f32 %v441_v7, %v435_v0 }
  0xcd   :  { %s1502_s29 = sld [smem:[#allocation9 + $0x3f]]  ;;  %v454_v52 = vmul.f32 %v453_v40, %v1326_v22  ;;  %v456_v56 = vstv %s1486_s26 }
  0xce   :  { %s1895_s16 = sld [smem:[#allocation20_spill]]  ;;  %v347_v25 = vadd.f32 %v346_v9, %v324_v8 }
  0xcf   :  { %s1506_s17 = sld [smem:[#allocation6 + $0x10]]  ;;  %v457_v4 = vadd.f32 %v456_v56, %v454_v52 }
  0xd0   :  { %s1508_s1 = sld [smem:[#allocation7 + $0x10]]  ;;  %v468_v30 = vstv %s1497_s28 }
  0xd1   :  { %v353_v10 = vstv %s1892_s20  ;;  %s1896_s27 = sld [smem:[#allocation27_spill]]  ;;  %v458_v19 = vmax.f32 %v457_v4, 0.0 }
  0xd2   :  { %v357_v11 = vstv %s1893_s21  ;;  %s1512_s30 = sld [smem:[#allocation9 + $0x40]]  ;;  %v354_v23 = vmul.f32 %v353_v10, %v343_v59  ;;  %v427_v10 = vmul.f32 %v426_v63, %v412_v47 }
  0xd3   :  { %1894 = sst [smem:[#allocation23_spill]] %s1502_s29  ;;  %v358_v26 = vmul.f32 %v357_v11, %v343_v59  ;;  %v422_v59 = vstv %s1454_s15  ;;  %v445_v11 = vstv %s1475_s5  ;;  %v469_v39 = vmul.f32 %v468_v30, %v458_v19 }
  0xd4   :  { %v368_v13 = vstv %s1895_s16  ;;  %s1897_s4 = sld [smem:[#allocation21_spill]]  ;;  %v355_v37 = vadd.f32 %v354_v23, %v332_v20  ;;  %v423_v6 = vmul.f32 %v422_v59, %v412_v47  ;;  %v460_v20 = vstv %s1490_s11 }
  0xd5   :  { %s1898_s10 = sld [smem:[#allocation22_spill]]  ;;  %v369_v29 = vmul.f32 %v368_v13, %v366_v12  ;;  %v359_v41 = vadd.f32 %v358_v26, %v336_v21  ;;  %v476_v60 = vstv %s1506_s17  ;;  %v446_v23 = vmul.f32 %v445_v11, %v435_v0 }
  0xd6   :  { %s1516_s25 = sld [smem:[#allocation9 + $0x41]]  ;;  %v477_v8 = vmul.f32 %v476_v60, %v1326_v22 }
  0xd7   :  { %s1520_s29 = sld [smem:[#allocation9 + $0x42]]  ;;  %v372_v24 = vstv %s1896_s27  ;;  %v370_v45 = vadd.f32 %v369_v29, %v347_v25 }
  0xd8   :  { %s1523_s20 = sld [smem:[#allocation9 + $0x43]]  ;;  %v373_v34 = vmul.f32 %v372_v24, %v366_v12  ;;  %v464_v24 = vstv %s1494_s22  ;;  %v483_v40 = vstv %s1512_s30 }
  0xd9   :  { %s1527_s21 = sld [smem:[#allocation6 + $0x11]]  ;;  %v393_v61 = vadd.f32 %v392_v46, %v370_v45  ;;  %v465_v35 = vmul.f32 %v464_v24, %v458_v19 }
  0xda   :  { %v376_v27 = vstv %s1897_s4  ;;  %s1530_s23 = sld [smem:[#allocation7 + $0x11]]  ;;  %v374_v49 = vadd.f32 %v373_v34, %v351_v33  ;;  %v461_v34 = vmul.f32 %v460_v20, %v458_v19 }
  0xdb   :  { %v380_v28 = vstv %s1898_s10  ;;  %s1534_s3 = sld [smem:[#allocation9 + $0x44]]  ;;  %v377_v38 = vmul.f32 %v376_v27, %v366_v12  ;;  %v416_v13 = vadd.f32 %v415_v62, %v393_v61  ;;  %v450_v27 = vmul.f32 %v449_v15, %v435_v0 }
  0xdc   :  { %s1538_s16 = sld [smem:[#allocation9 + $0x45]]  ;;  %v381_v42 = vmul.f32 %v380_v28, %v366_v12  ;;  %v397_v1 = vadd.f32 %v396_v50, %v374_v49  ;;  %v479_v12 = vstv %s1508_s1 }
  0xdd   :  { %s1542_s27 = sld [smem:[#allocation9 + $0x46]]  ;;  %v378_v53 = vadd.f32 %v377_v38, %v355_v37  ;;  %v480_v25 = vadd.f32 %v479_v12, %v477_v8  ;;  %v439_v29 = vadd.f32 %v438_v14, %v416_v13  ;;  %v491_v48 = vstv %s1520_s29 }
  0xde   :  { %s1544_s19 = sld [smem:[#allocation9 + $0x47]]  ;;  %v382_v57 = vadd.f32 %v381_v42, %v359_v41  ;;  %v420_v17 = vadd.f32 %v419_v2, %v397_v1  ;;  %v487_v41 = vstv %s1516_s25  ;;  %v495_v52 = vstv %s1523_s20 }
  0xdf   :  { %s1548_s18 = sld [smem:[#allocation6 + $0x12]]  ;;  %v401_v5 = vadd.f32 %v400_v54, %v378_v53  ;;  %v499_v16 = vstv %s1527_s21  ;;  %v481_v38 = vmax.f32 %v480_v25, 0.0  ;;  %v462_v46 = vadd.f32 %v461_v34, %v439_v29 }
  0xe0   :  { %s1552_s9 = sld [smem:[#allocation7 + $0x12]]  ;;  %v405_v9 = vadd.f32 %v404_v58, %v382_v57  ;;  %v500_v28 = vmul.f32 %v499_v16, %v1326_v22  ;;  %v502_v32 = vstv %s1530_s23  ;;  %v443_v33 = vadd.f32 %v442_v18, %v420_v17 }
  0xe1   :  { %s1556_s12 = sld [smem:[#allocation9 + $0x48]]  ;;  %v424_v21 = vadd.f32 %v423_v6, %v401_v5  ;;  %v484_v50 = vmul.f32 %v483_v40, %v481_v38  ;;  %v488_v51 = vmul.f32 %v487_v41, %v481_v38  ;;  %v492_v56 = vmul.f32 %v491_v48, %v481_v38 }
  0xe2   :  { %s1559_s2 = sld [smem:[#allocation9 + $0x49]]  ;;  %v428_v26 = vadd.f32 %v427_v10, %v405_v9  ;;  %v503_v42 = vadd.f32 %v502_v32, %v500_v28  ;;  %v466_v47 = vadd.f32 %v465_v35, %v443_v33  ;;  %v506_v57 = vstv %s1534_s3 }
  0xe3   :  { %s1562_s6 = sld [smem:[#allocation9 + $0x4a]]  ;;  %v447_v37 = vadd.f32 %v446_v23, %v424_v21  ;;  %v510_v58 = vstv %s1538_s16  ;;  %v496_v61 = vmul.f32 %v495_v52, %v481_v38  ;;  %v485_v63 = vadd.f32 %v484_v50, %v462_v46 }
  0xe4   :  { %s1566_s15 = sld [smem:[#allocation9 + $0x4b]]  ;;  %v451_v43 = vadd.f32 %v450_v27, %v428_v26  ;;  %v504_v55 = vmax.f32 %v503_v42, 0.0  ;;  %v489_v0 = vadd.f32 %v488_v51, %v466_v47  ;;  %v514_v1 = vstv %s1542_s27 }
  0xe5   :  { %s1570_s7 = sld [smem:[#allocation6 + $0x13]]  ;;  %v522_v36 = vstv %s1548_s18  ;;  %v470_v54 = vadd.f32 %v469_v39, %v447_v37  ;;  %v518_v5 = vstv %s1544_s19 }
  0xe6   :  { %s1574_s13 = sld [smem:[#allocation7 + $0x13]]  ;;  %v523_v45 = vmul.f32 %v522_v36, %v1326_v22  ;;  %v525_v49 = vstv %s1552_s9  ;;  %v507_v3 = vmul.f32 %v506_v57, %v504_v55  ;;  %v511_v4 = vmul.f32 %v510_v58, %v504_v55 }
  0xe7   :  { %s1899_s24 = sld [smem:[#allocation23_spill]]  ;;  %v493_v7 = vadd.f32 %v492_v56, %v470_v54  ;;  %v515_v9 = vmul.f32 %v514_v1, %v504_v55  ;;  %v529_v10 = vstv %s1556_s12  ;;  %v519_v14 = vmul.f32 %v518_v5, %v504_v55 }
  0xe8   :  { %s1577_s0 = sld [smem:[#allocation9 + $0x4c]]  ;;  %v526_v59 = vadd.f32 %v525_v49, %v523_v45  ;;  %v533_v11 = vstv %s1559_s2  ;;  %v508_v16 = vadd.f32 %v507_v3, %v485_v63  ;;  %v512_v17 = vadd.f32 %v511_v4, %v489_v0 }
  0xe9   :  { %s1580_s5 = sld [smem:[#allocation9 + $0x4d]]  ;;  %v537_v18 = vstv %s1562_s6  ;;  %v516_v25 = vadd.f32 %v515_v9, %v493_v7 }
  0xea   :  { %s1583_s8 = sld [smem:[#allocation9 + $0x4e]]  ;;  %v527_v8 = vmax.f32 %v526_v59, 0.0  ;;  %v541_v23 = vstv %s1566_s15 }
  0xeb   :  { %s1588_s14 = sld [smem:[#allocation9 + $0x4f]]  ;;  %v545_v53 = vstv %s1570_s7 }
  0xec   :  { %s1591_s26 = sld [smem:[#allocation6 + $0x14]]  ;;  %v546_v62 = vmul.f32 %v545_v53, %v1326_v22  ;;  %v548_v2 = vstv %s1574_s13  ;;  %v530_v20 = vmul.f32 %v529_v10, %v527_v8  ;;  %v534_v21 = vmul.f32 %v533_v11, %v527_v8 }
  0xed   :  { %v472_v31 = vstv %s1899_s24  ;;  %s1593_s11 = sld [smem:[#allocation7 + $0x14]]  ;;  %v538_v27 = vmul.f32 %v537_v18, %v527_v8  ;;  %v542_v32 = vmul.f32 %v541_v23, %v527_v8 }
  0xee   :  { %s1597_s22 = sld [smem:[#allocation9 + $0x50]]  ;;  %v473_v44 = vmul.f32 %v472_v31, %v458_v19  ;;  %v549_v12 = vadd.f32 %v548_v2, %v546_v62  ;;  %v552_v28 = vstv %s1577_s0  ;;  %v531_v34 = vadd.f32 %v530_v20, %v508_v16 }
  0xef   :  { %s1600_s28 = sld [smem:[#allocation9 + $0x51]]  ;;  %v556_v29 = vstv %s1580_s5  ;;  %v535_v35 = vadd.f32 %v534_v21, %v512_v17  ;;  %v539_v42 = vadd.f32 %v538_v27, %v516_v25 }
  0xf0   :  { %s1604_s17 = sld [smem:[#allocation9 + $0x52]]  ;;  %v474_v60 = vadd.f32 %v473_v44, %v451_v43  ;;  %v550_v26 = vmax.f32 %v549_v12, 0.0  ;;  %v560_v36 = vstv %s1583_s8 }
  0xf1   :  { %s1608_s1 = sld [smem:[#allocation9 + $0x53]]  ;;  %v564_v40 = vstv %s1588_s14 }
  0xf2   :  { %s1610_s30 = sld [smem:[#allocation6 + $0x15]]  ;;  %v568_v6 = vstv %s1591_s26  ;;  %v497_v13 = vadd.f32 %v496_v61, %v474_v60  ;;  %v553_v38 = vmul.f32 %v552_v28, %v550_v26  ;;  %v557_v39 = vmul.f32 %v556_v29, %v550_v26 }
  0xf3   :  { %s1614_s29 = sld [smem:[#allocation7 + $0x15]]  ;;  %v569_v15 = vmul.f32 %v568_v6, %v1326_v22  ;;  %v571_v19 = vstv %s1593_s11  ;;  %v561_v44 = vmul.f32 %v560_v36, %v550_v26  ;;  %v565_v49 = vmul.f32 %v564_v40, %v550_v26 }
  0xf4   :  { %s1617_s4 = sld [smem:[#allocation9 + $0x54]]  ;;  %v520_v31 = vadd.f32 %v519_v14, %v497_v13  ;;  %v575_v45 = vstv %s1597_s22  ;;  %v554_v51 = vadd.f32 %v553_v38, %v531_v34  ;;  %v558_v52 = vadd.f32 %v557_v39, %v535_v35 }
  0xf5   :  { %s1621_s10 = sld [smem:[#allocation9 + $0x55]]  ;;  %v572_v30 = vadd.f32 %v571_v19, %v569_v15  ;;  %v579_v46 = vstv %s1600_s28  ;;  %v562_v59 = vadd.f32 %v561_v44, %v539_v42 }
  0xf6   :  { %s1625_s25 = sld [smem:[#allocation9 + $0x56]]  ;;  %v543_v48 = vadd.f32 %v542_v32, %v520_v31  ;;  %v583_v53 = vstv %s1604_s17 }
  0xf7   :  { %s1627_s20 = sld [smem:[#allocation9 + $0x57]]  ;;  %v573_v43 = vmax.f32 %v572_v30, 0.0  ;;  %v587_v57 = vstv %s1608_s1 }
  0xf8   :  { %s1631_s21 = sld [smem:[#allocation6 + $0x16]]  ;;  %v591_v24 = vstv %s1610_s30  ;;  %v566_v1 = vadd.f32 %v565_v49, %v543_v48 }
  0xf9   :  { %s1634_s23 = sld [smem:[#allocation7 + $0x16]]  ;;  %v592_v33 = vmul.f32 %v591_v24, %v1326_v22  ;;  %v594_v37 = vstv %s1614_s29  ;;  %v576_v55 = vmul.f32 %v575_v45, %v573_v43  ;;  %v580_v56 = vmul.f32 %v579_v46, %v573_v43 }
  0xfa   :  { %s1638_s3 = sld [smem:[#allocation9 + $0x58]]  ;;  %v584_v61 = vmul.f32 %v583_v53, %v573_v43  ;;  %v598_v62 = vstv %s1617_s4  ;;  %v588_v2 = vmul.f32 %v587_v57, %v573_v43 }
  0xfb   :  { %s1642_s16 = sld [smem:[#allocation9 + $0x59]]  ;;  %v595_v47 = vadd.f32 %v594_v37, %v592_v33  ;;  %v602_v63 = vstv %s1621_s10  ;;  %v577_v4 = vadd.f32 %v576_v55, %v554_v51  ;;  %v581_v5 = vadd.f32 %v580_v56, %v558_v52 }
  0xfc   :  { %s1644_s27 = sld [smem:[#allocation9 + $0x5a]]  ;;  %v606_v6 = vstv %s1625_s25  ;;  %v585_v12 = vadd.f32 %v584_v61, %v562_v59  ;;  %v589_v18 = vadd.f32 %v588_v2, %v566_v1 }
  0xfd   :  { %s1648_s19 = sld [smem:[#allocation9 + $0x5b]]  ;;  %v596_v60 = vmax.f32 %v595_v47, 0.0  ;;  %v610_v10 = vstv %s1627_s20 }
  0xfe   :  { %s1651_s18 = sld [smem:[#allocation6 + $0x17]]  ;;  %v614_v41 = vstv %s1631_s21 }
  0xff   :  { %s1655_s9 = sld [smem:[#allocation7 + $0x17]]  ;;  %v615_v50 = vmul.f32 %v614_v41, %v1326_v22  ;;  %v617_v54 = vstv %s1634_s23  ;;  %v599_v8 = vmul.f32 %v598_v62, %v596_v60  ;;  %v603_v9 = vmul.f32 %v602_v63, %v596_v60 }
 0x100   :  { %s1659_s12 = sld [smem:[#allocation9 + $0x5c]]  ;;  %v621_v14 = vstv %s1638_s3  ;;  %v607_v19 = vmul.f32 %v606_v6, %v596_v60  ;;  %v611_v20 = vmul.f32 %v610_v10, %v596_v60 }
 0x101   :  { %s1661_s2 = sld [smem:[#allocation9 + $0x5d]]  ;;  %v618_v0 = vadd.f32 %v617_v54, %v615_v50  ;;  %v625_v15 = vstv %s1642_s16  ;;  %v600_v23 = vadd.f32 %v599_v8, %v577_v4  ;;  %v604_v24 = vadd.f32 %v603_v9, %v581_v5 }
 0x102   :  { %s1665_s6 = sld [smem:[#allocation9 + $0x5e]]  ;;  %v629_v27 = vstv %s1644_s27  ;;  %v608_v32 = vadd.f32 %v607_v19, %v585_v12  ;;  %v612_v33 = vadd.f32 %v611_v20, %v589_v18 }
 0x103   :  { %s1668_s15 = sld [smem:[#allocation9 + $0x5f]]  ;;  %v619_v13 = vmax.f32 %v618_v0, 0.0  ;;  %v633_v28 = vstv %s1648_s19 }
 0x104   :  { %s1672_s7 = sld [smem:[#allocation6 + $0x18]]  ;;  %v637_v58 = vstv %s1651_s18 }
 0x105   :  { %s1676_s13 = sld [smem:[#allocation7 + $0x18]]  ;;  %v638_v3 = vmul.f32 %v637_v58, %v1326_v22  ;;  %v640_v7 = vstv %s1655_s9  ;;  %v622_v25 = vmul.f32 %v621_v14, %v619_v13  ;;  %v626_v26 = vmul.f32 %v625_v15, %v619_v13 }
 0x106   :  { %s1678_s24 = sld [smem:[#allocation9 + $0x60]]  ;;  %v644_v34 = vstv %s1659_s12  ;;  %v630_v36 = vmul.f32 %v629_v27, %v619_v13  ;;  %v634_v37 = vmul.f32 %v633_v28, %v619_v13 }
 0x107   :  { %s1682_s0 = sld [smem:[#allocation9 + $0x61]]  ;;  %v641_v16 = vadd.f32 %v640_v7, %v638_v3  ;;  %v648_v35 = vstv %s1661_s2  ;;  %v623_v40 = vadd.f32 %v622_v25, %v600_v23  ;;  %v627_v41 = vadd.f32 %v626_v26, %v604_v24 }
 0x108   :  { %s1685_s5 = sld [smem:[#allocation9 + $0x62]]  ;;  %v652_v42 = vstv %s1665_s6  ;;  %v631_v49 = vadd.f32 %v630_v36, %v608_v32  ;;  %v635_v50 = vadd.f32 %v634_v37, %v612_v33 }
 0x109   :  { %s1689_s8 = sld [smem:[#allocation9 + $0x63]]  ;;  %v642_v29 = vmax.f32 %v641_v16, 0.0  ;;  %v656_v45 = vstv %s1668_s15 }
 0x10a   :  { %v660_v11 = vstv %s1672_s7  ;;  %s1693_s14 = sld [smem:[#allocation6 + $0x19]] }
 0x10b   :  { %s1695_s26 = sld [smem:[#allocation7 + $0x19]]  ;;  %v661_v17 = vmul.f32 %v660_v11, %v1326_v22  ;;  %v663_v21 = vstv %s1676_s13  ;;  %v645_v43 = vmul.f32 %v644_v34, %v642_v29  ;;  %v649_v44 = vmul.f32 %v648_v35, %v642_v29 }
 0x10c   :  { %s1700_s11 = sld [smem:[#allocation9 + $0x64]]  ;;  %v667_v47 = vstv %s1678_s24  ;;  %v653_v53 = vmul.f32 %v652_v42, %v642_v29  ;;  %v657_v54 = vmul.f32 %v656_v45, %v642_v29 }
 0x10d   :  { %s1703_s22 = sld [smem:[#allocation9 + $0x65]]  ;;  %v664_v30 = vadd.f32 %v663_v21, %v661_v17  ;;  %v671_v51 = vstv %s1682_s0  ;;  %v646_v57 = vadd.f32 %v645_v43, %v623_v40  ;;  %v650_v58 = vadd.f32 %v649_v44, %v627_v41 }
 0x10e   :  { %s1705_s28 = sld [smem:[#allocation9 + $0x66]]  ;;  %v675_v61 = vstv %s1685_s5  ;;  %v654_v2 = vadd.f32 %v653_v53, %v631_v49  ;;  %v658_v3 = vadd.f32 %v657_v54, %v635_v50 }
 0x10f   :  { %s1709_s17 = sld [smem:[#allocation9 + $0x67]]  ;;  %v665_v46 = vmax.f32 %v664_v30, 0.0  ;;  %v679_v62 = vstv %s1689_s8 }
 0x110   :  { %v683_v31 = vstv %s1693_s14  ;;  %s1038_s1 = sld [smem:[#allocation6 + $0x1a]] }
 0x111   :  { %s1714_s30 = sld [smem:[#allocation7 + $0x1a]]  ;;  %v684_v38 = vmul.f32 %v683_v31, %v1326_v22  ;;  %v686_v39 = vstv %s1695_s26  ;;  %v668_v59 = vmul.f32 %v667_v47, %v665_v46  ;;  %v672_v60 = vmul.f32 %v671_v51, %v665_v46 }
 0x112   :  { %s1718_s29 = sld [smem:[#allocation9 + $0x68]]  ;;  %v690_v0 = vstv %s1700_s11  ;;  %v676_v6 = vmul.f32 %v675_v61, %v665_v46  ;;  %v680_v7 = vmul.f32 %v679_v62, %v665_v46 }
 0x113   :  { %s1721_s4 = sld [smem:[#allocation9 + $0x69]]  ;;  %v687_v48 = vadd.f32 %v686_v39, %v684_v38  ;;  %v694_v4 = vstv %s1703_s22  ;;  %v669_v5 = vadd.f32 %v668_v59, %v646_v57  ;;  %v673_v9 = vadd.f32 %v672_v60, %v650_v58 }
 0x114   :  { %s1724_s10 = sld [smem:[#allocation9 + $0x6a]]  ;;  %v698_v11 = vstv %s1705_s28  ;;  %v677_v18 = vadd.f32 %v676_v6, %v654_v2  ;;  %v681_v23 = vadd.f32 %v680_v7, %v658_v3 }
 0x115   :  { %s1727_s25 = sld [smem:[#allocation9 + $0x6b]]  ;;  %v688_v63 = vmax.f32 %v687_v48, 0.0  ;;  %v702_v12 = vstv %s1709_s17 }
 0x116   :  { %v706_v52 = vstv %s1038_s1  ;;  %s1730_s20 = sld [smem:[#allocation6 + $0x1b]] }
 0x117   :  { %v707_v55 = vmul.f32 %v706_v52, %v1326_v22  ;;  %v709_v56 = vstv %s1714_s30  ;;  %s1734_s21 = sld [smem:[#allocation7 + $0x1b]]  ;;  %v691_v10 = vmul.f32 %v690_v0, %v688_v63  ;;  %v695_v13 = vmul.f32 %v694_v4, %v688_v63 }
 0x118   :  { %s1736_s23 = sld [smem:[#allocation9 + $0x6c]]  ;;  %v713_v17 = vstv %s1718_s29  ;;  %v699_v19 = vmul.f32 %v698_v11, %v688_v63  ;;  %v703_v25 = vmul.f32 %v702_v12, %v688_v63 }
 0x119   :  { %s1740_s3 = sld [smem:[#allocation9 + $0x6d]]  ;;  %v710_v1 = vadd.f32 %v709_v56, %v707_v55  ;;  %v717_v20 = vstv %s1721_s4  ;;  %v692_v24 = vadd.f32 %v691_v10, %v669_v5  ;;  %v696_v27 = vadd.f32 %v695_v13, %v673_v9 }
 0x11a   :  { %s1743_s16 = sld [smem:[#allocation9 + $0x6e]]  ;;  %v721_v26 = vstv %s1724_s10  ;;  %v700_v35 = vadd.f32 %v699_v19, %v677_v18  ;;  %v704_v39 = vadd.f32 %v703_v25, %v681_v23 }
 0x11b   :  { %s1746_s27 = sld [smem:[#allocation9 + $0x6f]]  ;;  %v711_v14 = vmax.f32 %v710_v1, 0.0  ;;  %v725_v29 = vstv %s1727_s25 }
 0x11c   :  { %v729_v8 = vstv %s1730_s20  ;;  %s1050_s19 = sld [smem:[#allocation6 + $0x1c]] }
 0x11d   :  { %s1751_s18 = sld [smem:[#allocation7 + $0x1c]]  ;;  %v730_v15 = vmul.f32 %v729_v8, %v1326_v22  ;;  %v732_v16 = vstv %s1734_s21  ;;  %v714_v28 = vmul.f32 %v713_v17, %v711_v14  ;;  %v718_v31 = vmul.f32 %v717_v20, %v711_v14 }
 0x11e   :  { %s1755_s9 = sld [smem:[#allocation9 + $0x70]]  ;;  %v722_v36 = vmul.f32 %v721_v26, %v711_v14  ;;  %v736_v37 = vstv %s1736_s23  ;;  %v726_v40 = vmul.f32 %v725_v29, %v711_v14 }
 0x11f   :  { %s1758_s12 = sld [smem:[#allocation9 + $0x71]]  ;;  %v733_v21 = vadd.f32 %v732_v16, %v730_v15  ;;  %v740_v38 = vstv %s1740_s3  ;;  %v715_v43 = vadd.f32 %v714_v28, %v692_v24  ;;  %v719_v45 = vadd.f32 %v718_v31, %v696_v27  ;;  %s1182_s3 = smov [#allocation12]  }
 0x120   :  { %s1761_s2 = sld [smem:[#allocation9 + $0x72]]  ;;  %v744_v41 = vstv %s1743_s16  ;;  %v723_v49 = vadd.f32 %v722_v36, %v700_v35  ;;  %v727_v53 = vadd.f32 %v726_v40, %v704_v39  ;;  %s868_s16 = sshll.u32 %s1182_s3, 4  ;;  %s869_s16 = int_to_ptr.vmem [resolvable:$true] %s868_s16 }
 0x121   :  { %s1764_s6 = sld [smem:[#allocation9 + $0x73]]  ;;  %v734_v32 = vmax.f32 %v733_v21, 0.0  ;;  %v748_v44 = vstv %s1746_s27  ;;  %s1147_s27 = scalar_lea.vmem %s869_s16, 512 }
 0x122   :  { %v752_v30 = vstv %s1050_s19  ;;  %s1767_s15 = sld [smem:[#allocation6 + $0x1d]]  ;;  %p1148_p6 = scmp.ne.s32.totalorder %s869_s16, %s1147_s27 }
 0x123   :  { %v753_v33 = vmul.f32 %v752_v30, %v1326_v22  ;;  %v755_v34 = vstv %s1751_s18  ;;  %s1771_s7 = sld [smem:[#allocation7 + $0x1d]]  ;;  %v737_v46 = vmul.f32 %v736_v37, %v734_v32  ;;  %v741_v47 = vmul.f32 %v740_v38, %v734_v32  ;;  %p1152_p7 = scmp.lt.s32.totalorder %s869_s16, %s869_s16 }
 0x124   :  { %s1775_s13 = sld [smem:[#allocation9 + $0x74]]  ;;  %v745_v50 = vmul.f32 %v744_v41, %v734_v32  ;;  %v759_v51 = vstv %s1755_s9  ;;  %v749_v54 = vmul.f32 %v748_v44, %v734_v32  ;;  %p1153_p8 = scmp.lt.s32.totalorder %s1147_s27, %s1147_s27 }
 0x125   :  { %v756_v42 = vadd.f32 %v755_v34, %v753_v33  ;;  %s1778_s24 = sld [smem:[#allocation9 + $0x75]]  ;;  %v763_v55 = vstv %s1758_s12  ;;  %v738_v60 = vadd.f32 %v737_v46, %v715_v43  ;;  %v742_v61 = vadd.f32 %v741_v47, %v719_v45 }
 0x126   :  { %s1781_s0 = sld [smem:[#allocation9 + $0x76]]  ;;  %v767_v56 = vstv %s1761_s2  ;;  %v746_v63 = vadd.f32 %v745_v50, %v723_v49  ;;  %v750_v3 = vadd.f32 %v749_v54, %v727_v53  ;;  %p1154_p9 = por %p1153_p8, %p1152_p7 }
 0x127   :  { %v757_v48 = vmax.f32 %v756_v42, 0.0  ;;  %s1783_s5 = sld [smem:[#allocation9 + $0x77]]  ;;  %v771_v57 = vstv %s1764_s6 }
 0x128   :  { %v775_v52 = vstv %s1767_s15  ;;  %s1062_s8 = sld [smem:[#allocation6 + $0x1e]]  ;;  %p1155_p10 = pnand %p1154_p9, %p1148_p6 }
 0x129   :  { %s1789_s14 = sld [smem:[#allocation7 + $0x1e]]  ;;  %v776_v58 = vmul.f32 %v775_v52, %v1326_v22  ;;  %v778_v59 = vstv %s1771_s7  ;;  %v760_v62 = vmul.f32 %v759_v51, %v757_v48  ;;  %v764_v0 = vmul.f32 %v763_v55, %v757_v48 }
 0x12a   :  { %s1794_s26 = sld [smem:[#allocation9 + $0x78]]  ;;  %v768_v1 = vmul.f32 %v767_v56, %v757_v48  ;;  %v772_v4 = vmul.f32 %v771_v57, %v757_v48  ;;  %v782_v5 = vstv %s1775_s13 }
 0x12b   :  { %s1796_s11 = sld [smem:[#allocation9 + $0x79]]  ;;  %v779_v2 = vadd.f32 %v778_v59, %v776_v58  ;;  %v786_v6 = vstv %s1778_s24  ;;  %v761_v11 = vadd.f32 %v760_v62, %v738_v60  ;;  %v765_v14 = vadd.f32 %v764_v0, %v742_v61 }
 0x12c   :  { %s1798_s22 = sld [smem:[#allocation9 + $0x7a]]  ;;  %v790_v8 = vstv %s1781_s0  ;;  %v769_v15 = vadd.f32 %v768_v1, %v746_v63  ;;  %v773_v18 = vadd.f32 %v772_v4, %v750_v3 }
 0x12d   :  { %s1802_s28 = sld [smem:[#allocation9 + $0x7b]]  ;;  %v780_v7 = vmax.f32 %v779_v2, 0.0  ;;  %v794_v9 = vstv %s1783_s5 }
 0x12e   :  { %v798_v10 = vstv %s1062_s8  ;;  %s1806_s17 = sld [smem:[#allocation6 + $0x1f]] }
 0x12f   :  { %v799_v12 = vmul.f32 %v798_v10, %v1326_v22  ;;  %v801_v13 = vstv %s1789_s14  ;;  %s1810_s1 = sld [smem:[#allocation7 + $0x1f]]  ;;  %v783_v16 = vmul.f32 %v782_v5, %v780_v7  ;;  %v787_v17 = vmul.f32 %v786_v6, %v780_v7 }
 0x130   :  { %s1812_s30 = sld [smem:[#allocation9 + $0x7c]]  ;;  %v791_v19 = vmul.f32 %v790_v8, %v780_v7  ;;  %v795_v20 = vmul.f32 %v794_v9, %v780_v7  ;;  %v805_v23 = vstv %s1794_s26 }
 0x131   :  { %v802_v21 = vadd.f32 %v801_v13, %v799_v12  ;;  %s1814_s29 = sld [smem:[#allocation9 + $0x7d]]  ;;  %v809_v24 = vstv %s1796_s11  ;;  %v784_v28 = vadd.f32 %v783_v16, %v761_v11  ;;  %v788_v29 = vadd.f32 %v787_v17, %v765_v14 }
 0x132   :  { %s1818_s4 = sld [smem:[#allocation9 + $0x7e]]  ;;  %v813_v26 = vstv %s1798_s22  ;;  %v792_v31 = vadd.f32 %v791_v19, %v769_v15  ;;  %v796_v32 = vadd.f32 %v795_v20, %v773_v18 }
 0x133   :  { %v803_v25 = vmax.f32 %v802_v21, 0.0  ;;  %v817_v27 = vstv %s1802_s28  ;;  %s1073_s10 = sld [smem:[#allocation9 + $0x7f]] }
 0x134   :  { %v821_v30 = vstv %s1806_s17  ;;  %s1823_s25 = sld [smem:[#allocation10]] }
 0x135   :  { %v806_v33 = vmul.f32 %v805_v23, %v803_v25  ;;  %v810_v34 = vmul.f32 %v809_v24, %v803_v25  ;;  %s1825_s20 = sld [smem:[#allocation10 + $0x1]]  ;;  %v814_v35 = vmul.f32 %v813_v26, %v803_v25  ;;  %v818_v36 = vmul.f32 %v817_v27, %v803_v25 }
 0x136   :  { %v822_v37 = vmul.f32 %v821_v30, %v1326_v22  ;;  %v824_v38 = vstv %s1810_s1  ;;  %s1075_s21 = sld [smem:[#allocation10 + $0x2]]  ;;  %v828_v40 = vstv %s1812_s30 }
 0x137   :  { %s1076_s23 = sld [smem:[#allocation10 + $0x3]]  ;;  %v807_v41 = vadd.f32 %v806_v33, %v784_v28  ;;  %v832_v42 = vstv %s1814_s29  ;;  %v811_v45 = vadd.f32 %v810_v34, %v788_v29  ;;  %v815_v46 = vadd.f32 %v814_v35, %v792_v31 }
 0x138   :  { %v825_v39 = vadd.f32 %v824_v38, %v822_v37  ;;  %v836_v43 = vstv %s1818_s4  ;;  %v819_v47 = vadd.f32 %v818_v36, %v796_v32 }
 0x139   :  { %v840_v44 = vstv %s1073_s10 }
 0x13a   :  { %v826_v48 = vmax.f32 %v825_v39, 0.0  ;;  %v844_v22 = vstv %s1823_s25 }
 0x13b   :  { %v849_v53 = vstv %s1825_s20 }
 0x13c   :  { %v829_v49 = vmul.f32 %v828_v40, %v826_v48  ;;  %v833_v50 = vmul.f32 %v832_v42, %v826_v48  ;;  %v837_v51 = vmul.f32 %v836_v43, %v826_v48  ;;  %v841_v52 = vmul.f32 %v840_v44, %v826_v48 }
 0x13d   :  { %v854_v54 = vstv %s1075_s21  ;;  %v859_v55 = vstv %s1076_s23 }
 0x13e   :  { %v830_v56 = vadd.f32 %v829_v49, %v807_v41  ;;  %v834_v57 = vadd.f32 %v833_v50, %v811_v45  ;;  %v838_v58 = vadd.f32 %v837_v51, %v815_v46  ;;  %v842_v59 = vadd.f32 %v841_v52, %v819_v47 }
 0x140   :  { %v845_v60 = vadd.f32 %v844_v22, %v830_v56  ;;  %v850_v61 = vadd.f32 %v849_v53, %v834_v57  ;;  %v855_v62 = vadd.f32 %v854_v54, %v838_v58  ;;  %v860_v63 = vadd.f32 %v859_v55, %v842_v59 }
 0x142   :  { %847 = vst.msk [vmem:[#allocation12] sm:$0xff] %vm846_vm0, %v845_v60  ;;  %852 = vst.msk [vmem:[#allocation12 + $0x8] sm:$0xff] %vm846_vm0, %v850_v61 }
 0x143   :  { %857 = vst.msk [vmem:[#allocation12 + $0x10] sm:$0xff] %vm846_vm0, %v855_v62  ;;  %862 = vst.msk [vmem:[#allocation12 + $0x18] sm:$0xff] %vm846_vm0, %v860_v63 }
 0x144   :  { %1158 = shalt.err (!%p1155_p10)
}
 0x145   :  { %s1183_s19 = smov 128   ;;  %s1184_s18 = smov 8  }
 0x146   :  { %s1900_s2 = sld [smem:[#allocation39_spill]] }
 0x14c   :  { %874 = dma.vmem_to_hbm [thread:$0]  %s869_s16, 512, %s1900_s2, [#allocation3], %s1183_s19, %s1183_s19, %s1184_s18  }
 0x14d   :  { %1175 = dma.done.wait [#allocation3], 512  }
 0x14e   :  { %1176 = vsyncadd [#allocation3], 4294966784 }
 0x14f   :  { %878 = vsyncpa [#allocation3], 1 }
 0x150   :  { %879 = vsyncpa [#allocation4], 1 }
 0x151   :  { %880 = vsyncpa [#allocation5], 1 }
 0x152   :  { %881 = vsyncpa [#allocation8], 1 }
 0x153   :  { %882 = vsyncpa [#allocation11], 1 }

</bundles_post_ra>
